<compile_context>
chip_gen: v7x
topology: tpu7x:2x2x1
jax: 0.10.0
libtpu: 0.0.40
codegen_flags: <defaults>
</compile_context>

<pallas_src>
import functools
import math

import jax
import jax.numpy as jnp
from jax import lax
from jax.experimental import pallas as pl
from jax.experimental.pallas import tpu as pltpu


def _round_up(x, m):
    return (x + m - 1) // m * m


def _preprocess(features, temperature):
    """L2-normalize (torch eps) and fold 1/temperature into the scale; bf16 out."""
    f = features.astype(jnp.float32)
    sumsq = jnp.sum(f * f, axis=1, keepdims=True)
    # torch F.normalize clamps ||f|| at 1e-12  ==  clamp sumsq at 1e-24 under rsqrt
    scale = lax.rsqrt(jnp.maximum(sumsq, 1e-24)) * (1.0 / math.sqrt(temperature))
    return (f * scale).astype(jnp.bfloat16)


def _default_blocks():
    """Per-generation (block_m, block_n, scoped-VMEM budget in bytes)."""
    kind = ""
    try:
        kind = jax.devices()[0].device_kind.lower()
    except Exception:
        pass
    if "v5 lite" in kind or "v5e" in kind or "v5lite" in kind:
        # 4x128x128 MXU, ~0.8 TB/s HBM: block_m=256 clears the ~240 flop/B crossover,
        # keep N at 256 (1 vst slot, no bf16 VPU -> smaller f32 score tiles).
        return 256, 256, 96 * 1024 * 1024
    if "v6" in kind:
        # 2x256x256 MXU, ~1.4 TB/s HBM: need block_m ~ 768-1024 to clear the
        # ~700 flop/B roofline crossover; 256-aligned N feeds the MXU fully.
        return 1024, 256, 96 * 1024 * 1024
    if "v7" in kind:
        # only 64 MiB VMEM per TC (32 MiB scoped default) -> smaller tiles plus an
        # explicit, conservative vmem limit.
        return 512, 256, 44 * 1024 * 1024
    # unknown generation: v7x-safe conservative defaults
    return 512, 256, 44 * 1024 * 1024


def _clamp_tile(default, batch):
    """Largest power-of-two tile (>=128) not exceeding `default` needed to cover B."""
    t = 128
    while t < default and t < batch:
        t *= 2
    return t


def _vmem_estimate(bm, bn, d_pad):
    return (2 * (bm + bn) * d_pad * 2     # fr + fc bf16 streams, double-buffered
            + 8 * bm * bn * 4             # f32 score-tile temporaries (generous)
            + 4 * bm * 128 * 4            # (bm, 1) scratch, lane-padded
            + (2 << 20))                  # misc headroom


def _supcon_kernel(tile_any_ref,                                   # scalar prefetch
                   lab_r_ref, lab_c_ref, sel_ref, npos_ref, fr_ref, fc_ref,
                   out_ref,
                   m_sc, l_sc, pos_sc,
                   *, batch, block_m, block_n):
    i = pl.program_id(0)
    j = pl.program_id(1)
    nj = pl.num_programs(1)
    any_sel = tile_any_ref[i] > 0          # does this row tile contain any anchor?

    @pl.when(any_sel)
    def _compute():
        @pl.when(j == 0)
        def _init():
            m_sc[...] = jnp.full_like(m_sc, -jnp.inf)
            l_sc[...] = jnp.zeros_like(l_sc)
            pos_sc[...] = jnp.zeros_like(pos_sc)

        # s[r, c] = <f_r, f_c> / temperature  (1/T folded into f; bf16 in, f32 acc)
        s = lax.dot_general(fr_ref[...], fc_ref[...],
                            (((1,), (1,)), ((), ())),
                            preferred_element_type=jnp.float32)     # (bm, bn)

        same = lab_r_ref[...] == lab_c_ref[...]                     # (bm, bn) bool

        # online softmax running max (raw max is a valid upper bound: padded cols
        # contribute s=0 and the diagonal only raises it -> stability unaffected).
        m_new = jnp.maximum(m_sc[...], jnp.max(s, axis=1, keepdims=True))
        alpha = jnp.exp(m_sc[...] - m_new)
        p = jnp.exp(s - m_new)
        m_sc[...] = m_new

        row0 = i * block_m
        col0 = j * block_n
        has_diag = jnp.logical_and(col0 < row0 + block_m, row0 < col0 + block_n)
        has_pad = col0 + block_n > batch
        needs_mask = jnp.logical_or(has_diag, has_pad)

        # Edge tiles only: build the keep-mask (exclude self-pair + padded columns)
        # and mask p *before* summation -> no subtract-after-sum cancellation.
        @pl.when(needs_mask)
        def _edge_tile():
            row_g = row0 + lax.broadcasted_iota(jnp.int32, (block_m, 1), 0)
            col_g = col0 + lax.broadcasted_iota(jnp.int32, (1, block_n), 1)
            keep = jnp.logical_and(row_g != col_g, col_g < batch)
            l_sc[...] = alpha * l_sc[...] + jnp.sum(
                jnp.where(keep, p, 0.0), axis=1, keepdims=True)
            pos_sc[...] += jnp.sum(
                jnp.where(jnp.logical_and(same, keep), s, 0.0),
                axis=1, keepdims=True)

        # Interior tiles: no iota / compare / mask multiply at all.
        @pl.when(jnp.logical_not(needs_mask))
        def _interior_tile():
            l_sc[...] = alpha * l_sc[...] + jnp.sum(p, axis=1, keepdims=True)
            pos_sc[...] += jnp.sum(jnp.where(same, s, 0.0), axis=1, keepdims=True)

    @pl.when(j == nj - 1)
    def _finalize():
        @pl.when(any_sel)
        def _write():
            # log sum_{k != i, valid} exp(s_ik)   (diag/pad already excluded from l)
            log_sum = jnp.log(l_sc[...]) + m_sc[...]
            npos = npos_ref[...]                       # positives per row (wrapper)
            sel = sel_ref[...] > 0.0                   # in worstk AND npos > 0
            row_sum = pos_sc[...] - npos * log_sum
            per_row = jnp.where(sel, row_sum / jnp.where(sel, npos, 1.0), 0.0)
            part_sum = jnp.sum(per_row)
            part_cnt = jnp.sum(jnp.where(sel, 1.0, 0.0))
            rid = lax.broadcasted_iota(jnp.int32, (8, 128), 0)
            out_ref[...] = jnp.where(rid == 0, part_sum,
                                     jnp.where(rid == 1, part_cnt, 0.0))

        @pl.when(jnp.logical_not(any_sel))
        def _skip():
            out_ref[...] = jnp.zeros_like(out_ref)


def supcon_loss6(worstk, features, labels, temperature=0.5,
                 block_m=None, block_n=None):
    features = jnp.asarray(features, jnp.float32)
    B, D = features.shape
    C = labels.shape[1]

    # ---- cheap O(B) JAX glue: class ids, worstk membership, positive counts ----
    lab = jnp.argmax(labels, axis=1).astype(jnp.int32)
    counts = jnp.zeros((C,), jnp.float32).at[lab].add(1.0)
    num_pos = jnp.take(counts, lab) - 1.0                  # same-class rows minus self
    wk = jnp.asarray(worstk, jnp.int32).reshape(1, -1)
    in_worst = jnp.any(lab[:, None] == wk, axis=1)
    sel = jnp.logical_and(in_worst, num_pos > 0).astype(jnp.float32)
    f = _preprocess(features, temperature)                  # bf16, L2-norm + 1/sqrt(T)

    # ---- generation-aware tiling ----
    bm_def, bn_def, vmem_cap = _default_blocks()
    if block_m is None:
        block_m = _clamp_tile(bm_def, B)
    if block_n is None:
        block_n = _clamp_tile(bn_def, B)
    d_pad = _round_up(D, 128)
    # shrink tiles if the double-buffered working set would blow the VMEM budget
    while _vmem_estimate(block_m, block_n, d_pad) > vmem_cap and block_n > 128:
        block_n //= 2
    while _vmem_estimate(block_m, block_n, d_pad) > vmem_cap and block_m > 128:
        block_m //= 2

    b_pad = _round_up(B, math.lcm(block_m, block_n))
    num_i = b_pad // block_m
    num_j = b_pad // block_n

    f_pad = jnp.zeros((b_pad, d_pad), jnp.bfloat16).at[:B, :D].set(f)
    lab_pad = jnp.full((b_pad,), -1, jnp.int32).at[:B].set(lab)   # -1 never matches
    sel_pad = jnp.zeros((b_pad,), jnp.float32).at[:B].set(sel)
    npos_pad = jnp.zeros((b_pad,), jnp.float32).at[:B].set(num_pos)

    lab_col = lab_pad.reshape(b_pad, 1)
    lab_row = lab_pad.reshape(1, b_pad)
    sel_col = sel_pad.reshape(b_pad, 1)
    npos_col = npos_pad.reshape(b_pad, 1)
    # per-row-tile "contains a selected anchor" flag (scalar prefetch -> SMEM)
    tile_any = (jnp.max(sel_pad.reshape(num_i, block_m), axis=1) > 0).astype(jnp.int32)

    kernel = functools.partial(_supcon_kernel, batch=B,
                               block_m=block_m, block_n=block_n)

    # tile_any gates compute (pl.when) AND bandwidth: for skipped row tiles the
    # feature index_maps pin the block index to 0, so the pipeline re-uses the
    # resident block instead of streaming fresh (block, d_pad) bf16 tiles from HBM.
    def fr_map(i, j, tany):
        return (i * tany[i], 0)

    def fc_map(i, j, tany):
        return (j * tany[i], 0)

    grid_spec = pltpu.PrefetchScalarGridSpec(
        num_scalar_prefetch=1,
        grid=(num_i, num_j),
        in_specs=[
            pl.BlockSpec((block_m, 1), lambda i, j, *_: (i, 0)),      # row labels
            pl.BlockSpec((1, block_n), lambda i, j, *_: (0, j)),      # col labels
            pl.BlockSpec((block_m, 1), lambda i, j, *_: (i, 0)),      # selected flag
            pl.BlockSpec((block_m, 1), lambda i, j, *_: (i, 0)),      # num positives
            pl.BlockSpec((block_m, d_pad), fr_map),                   # f row block
            pl.BlockSpec((block_n, d_pad), fc_map),                   # f col block
        ],
        out_specs=pl.BlockSpec((None, 8, 128), lambda i, j, *_: (i, 0, 0)),
        scratch_shapes=[pltpu.VMEM((block_m, 1), jnp.float32)] * 3,
    )

    parts = pl.pallas_call(
        kernel,
        grid_spec=grid_spec,
        out_shape=jax.ShapeDtypeStruct((num_i, 8, 128), jnp.float32),
        compiler_params=pltpu.CompilerParams(
            dimension_semantics=("parallel", "arbitrary"),
            vmem_limit_bytes=int(vmem_cap)),
    )(tile_any, lab_col, lab_row, sel_col, npos_col, f_pad, f_pad)

    total = jnp.sum(parts[:, 0, 0])
    count = jnp.sum(parts[:, 1, 0])
    # mean over selected anchors; NaN when none selected (torch mean of empty tensor)
    return -total / count


def _reference(worstk, features, labels, temperature=0.5, matmul_bf16=False):
    """Pure-JAX reference mirroring the PyTorch forward (optionally bf16 matmul)."""
    f = features.astype(jnp.float32)
    B = f.shape[0]
    lab = jnp.argmax(labels, axis=1).astype(jnp.int32)
    mask = (lab[:, None] == lab[None, :]).astype(jnp.float32)
    mask3 = jnp.max((lab[:, None] == worstk[None, :].astype(jnp.int32))
                    .astype(jnp.float32), axis=1)
    if matmul_bf16:
        fb = _preprocess(features, temperature)     # same numerics as the kernel
        adc = lax.dot_general(fb, fb, (((1,), (1,)), ((), ())),
                              preferred_element_type=jnp.float32)
    else:
        fn = f / jnp.maximum(jnp.linalg.norm(f, axis=1, keepdims=True), 1e-12)
        adc = (fn @ fn.T) / temperature
    logits = adc - jnp.max(adc, axis=1, keepdims=True)
    exp_logits = jnp.exp(logits)
    logits_mask = 1.0 - jnp.eye(B, dtype=jnp.float32)
    pos = mask * logits_mask
    neg = 1.0 - mask
    npr = jnp.sum(pos, axis=1)
    nprs = mask3 * npr
    den = (jnp.sum(exp_logits * neg, axis=1, keepdims=True)
           + jnp.sum(exp_logits * pos, axis=1, keepdims=True))
    log_probs = logits - jnp.log(den)
    row_sum = jnp.sum(log_probs * pos, axis=1)
    sel = nprs > 0
    per_row = jnp.where(sel, row_sum / jnp.where(sel, nprs, 1.0), 0.0)
    # TODO(synk): the torch data-dependent `raise` on NaN log_probs has no jit
    # equivalent; semantics of the returned loss are otherwise identical.
    return -jnp.sum(per_row) / jnp.sum(sel.astype(jnp.float32))


if __name__ == "__main__":
    key = jax.random.PRNGKey(0)
    B, D, C, K = 8, 32, 4, 2
    features = jax.random.normal(key, (B, D), dtype=jnp.float32)
    class_ids = jnp.array([0, 0, 1, 2, 2, 3, 1, 0], dtype=jnp.int32)
    labels = jax.nn.one_hot(class_ids, C, dtype=jnp.float32)          # [B, C]
    worstk = jnp.array([0, 1], dtype=jnp.int32)                       # [K]

    loss = jax.block_until_ready(supcon_loss6(worstk, features, labels, 0.5))

    ref_matched = jax.block_until_ready(
        _reference(worstk, features, labels, 0.5, matmul_bf16=True))
    ref_f32 = jax.block_until_ready(
        _reference(worstk, features, labels, 0.5, matmul_bf16=False))

    # strict check against a reference with identical (bf16-matmul) numerics
    assert jnp.allclose(loss, ref_matched, atol=2e-3, rtol=2e-3,
                        equal_nan=True), (loss, ref_matched)
    # loose check against the full-f32 PyTorch-mirroring reference
    assert jnp.allclose(loss, ref_f32, atol=1e-1, rtol=1e-1,
                        equal_nan=True), (loss, ref_f32)

    print("KERNEL_OK")
</pallas_src>

<mosaic_0001>
module attributes {stable_mosaic.version = 11 : i64} {
  func.func @_supcon_kernel(%arg0: i32, %arg1: i32, %arg2: memref<1xi32, #tpu.memory_space<smem>>, %arg3: memref<128x1xi32, #tpu.memory_space<vmem>>, %arg4: memref<1x128xi32, #tpu.memory_space<vmem>>, %arg5: memref<128x1xf32, #tpu.memory_space<vmem>>, %arg6: memref<128x1xf32, #tpu.memory_space<vmem>>, %arg7: memref<128x128xbf16, #tpu.memory_space<vmem>>, %arg8: memref<128x128xbf16, #tpu.memory_space<vmem>>, %arg9: memref<1x8x128xf32, #tpu.memory_space<vmem>>, %arg10: memref<128x1xf32, #tpu.memory_space<vmem>>, %arg11: memref<128x1xf32, #tpu.memory_space<vmem>>, %arg12: memref<128x1xf32, #tpu.memory_space<vmem>>) attributes {dimension_semantics = [#tpu.dimension_semantics<parallel>, #tpu.dimension_semantics<arbitrary>], iteration_bounds = array<i64: 1, 1>, scalar_prefetch = 1 : i64, scratch_operands = 3 : i64, tpu.core_type = #tpu.core_type<tc>, window_params = [{transform_indices = @transform_0, window_bounds = array<i64: 128, 1>}, {transform_indices = @transform_1, window_bounds = array<i64: 1, 128>}, {transform_indices = @transform_2, window_bounds = array<i64: 128, 1>}, {transform_indices = @transform_3, window_bounds = array<i64: 128, 1>}, {transform_indices = @transform_4, window_bounds = array<i64: 128, 128>}, {transform_indices = @transform_5, window_bounds = array<i64: 128, 128>}, {transform_indices = @transform_6, window_bounds = array<i64: 1, 8, 128>}]} {
    %0 = arith.index_cast %arg0 : i32 to index
    %1 = memref.load %arg2[%0] : memref<1xi32, #tpu.memory_space<smem>>
    %c0_i32 = arith.constant 0 : i32
    %2 = arith.cmpi sgt, %1, %c0_i32 : i32
    %3 = arith.extui %2 : i1 to i32
    %c0_i32_0 = arith.constant 0 : i32
    %4 = arith.cmpi ne, %3, %c0_i32_0 : i32
    scf.if %4 {
      %c0_i32_3 = arith.constant 0 : i32
      %8 = arith.cmpi eq, %arg1, %c0_i32_3 : i32
      %9 = arith.extui %8 : i1 to i32
      %c0_i32_4 = arith.constant 0 : i32
      %10 = arith.cmpi ne, %9, %c0_i32_4 : i32
      scf.if %10 {
        %cst_25 = arith.constant 0xFF800000 : f32
        %45 = vector.broadcast %cst_25 : f32 to vector<128x1xf32>
        %c0_26 = arith.constant 0 : index
        %c0_27 = arith.constant 0 : index
        %46 = vector.load %arg10[%c0_26, %c0_27] : memref<128x1xf32, #tpu.memory_space<vmem>>, vector<128x1xf32>
        tpu.vector_store %arg10[%c0_26, %c0_27], %45 {strides = array<i32>} : memref<128x1xf32, #tpu.memory_space<vmem>>, vector<128x1xf32>,
        %cst_28 = arith.constant 0.000000e+00 : f32
        %47 = vector.broadcast %cst_28 : f32 to vector<128x1xf32>
        %c0_29 = arith.constant 0 : index
        %c0_30 = arith.constant 0 : index
        %48 = vector.load %arg11[%c0_29, %c0_30] : memref<128x1xf32, #tpu.memory_space<vmem>>, vector<128x1xf32>
        tpu.vector_store %arg11[%c0_29, %c0_30], %47 {strides = array<i32>} : memref<128x1xf32, #tpu.memory_space<vmem>>, vector<128x1xf32>,
        %cst_31 = arith.constant 0.000000e+00 : f32
        %49 = vector.broadcast %cst_31 : f32 to vector<128x1xf32>
        %c0_32 = arith.constant 0 : index
        %c0_33 = arith.constant 0 : index
        %50 = vector.load %arg12[%c0_32, %c0_33] : memref<128x1xf32, #tpu.memory_space<vmem>>, vector<128x1xf32>
        tpu.vector_store %arg12[%c0_32, %c0_33], %49 {strides = array<i32>} : memref<128x1xf32, #tpu.memory_space<vmem>>, vector<128x1xf32>,
      } else {
      }
      %c0 = arith.constant 0 : index
      %c0_5 = arith.constant 0 : index
      %11 = vector.load %arg7[%c0, %c0_5] : memref<128x128xbf16, #tpu.memory_space<vmem>>, vector<128x128xbf16>
      %c0_6 = arith.constant 0 : index
      %c0_7 = arith.constant 0 : index
      %12 = vector.load %arg8[%c0_6, %c0_7] : memref<128x128xbf16, #tpu.memory_space<vmem>>, vector<128x128xbf16>
      %cst = arith.constant dense<0.000000e+00> : vector<128x128xf32>
      %13 = tpu.matmul %11, %12, %cst {dimension_numbers = #tpu.dot_dimension_numbers<[1], [1], [0], [0], [0, 0, 1, 0], [], []>} : vector<128x128xbf16>, vector<128x128xbf16>, vector<128x128xf32> -> vector<128x128xf32>
      %c0_8 = arith.constant 0 : index
      %c0_9 = arith.constant 0 : index
      %14 = vector.load %arg3[%c0_8, %c0_9] : memref<128x1xi32, #tpu.memory_space<vmem>>, vector<128x1xi32>
      %c0_10 = arith.constant 0 : index
      %c0_11 = arith.constant 0 : index
      %15 = vector.load %arg4[%c0_10, %c0_11] : memref<1x128xi32, #tpu.memory_space<vmem>>, vector<1x128xi32>
      %16 = vector.broadcast %14 : vector<128x1xi32> to vector<128x128xi32>
      %17 = vector.broadcast %15 : vector<1x128xi32> to vector<128x128xi32>
      %18 = arith.cmpi eq, %16, %17 : vector<128x128xi32>
      %c0_12 = arith.constant 0 : index
      %c0_13 = arith.constant 0 : index
      %19 = vector.load %arg10[%c0_12, %c0_13] : memref<128x1xf32, #tpu.memory_space<vmem>>, vector<128x1xf32>
      %cst_14 = arith.constant dense<0xFF800000> : vector<128xf32>
      %20 = vector.multi_reduction <maximumf>, %13, %cst_14 [1] : vector<128x128xf32> to vector<128xf32>
      %21 = vector.shape_cast %20 : vector<128xf32> to vector<128x1xf32>
      %22 = arith.maximumf %19, %21 : vector<128x1xf32>
      %c0_15 = arith.constant 0 : index
      %c0_16 = arith.constant 0 : index
      %23 = vector.load %arg10[%c0_15, %c0_16] : memref<128x1xf32, #tpu.memory_space<vmem>>, vector<128x1xf32>
      %24 = arith.subf %23, %22 : vector<128x1xf32>
      %25 = math.exp %24 : vector<128x1xf32>
      %26 = vector.broadcast %22 : vector<128x1xf32> to vector<128x128xf32>
      %27 = arith.subf %13, %26 : vector<128x128xf32>
      %28 = math.exp %27 : vector<128x128xf32>
      %c0_17 = arith.constant 0 : index
      %c0_18 = arith.constant 0 : index
      %29 = vector.load %arg10[%c0_17, %c0_18] : memref<128x1xf32, #tpu.memory_space<vmem>>, vector<128x1xf32>
      tpu.vector_store %arg10[%c0_17, %c0_18], %22 {strides = array<i32>} : memref<128x1xf32, #tpu.memory_space<vmem>>, vector<128x1xf32>,
      %c128_i32 = arith.constant 128 : i32
      %30 = arith.muli %arg0, %c128_i32 : i32
      %c128_i32_19 = arith.constant 128 : i32
      %31 = arith.muli %arg1, %c128_i32_19 : i32
      %c128_i32_20 = arith.constant 128 : i32
      %32 = arith.addi %30, %c128_i32_20 : i32
      %33 = arith.cmpi slt, %31, %32 : i32
      %c128_i32_21 = arith.constant 128 : i32
      %34 = arith.addi %31, %c128_i32_21 : i32
      %35 = arith.cmpi slt, %30, %34 : i32
      %36 = arith.andi %33, %35 : i1
      %c128_i32_22 = arith.constant 128 : i32
      %37 = arith.addi %31, %c128_i32_22 : i32
      %c8_i32 = arith.constant 8 : i32
      %38 = arith.cmpi sgt, %37, %c8_i32 : i32
      %39 = arith.ori %36, %38 : i1
      %40 = arith.extui %39 : i1 to i32
      %c0_i32_23 = arith.constant 0 : i32
      %41 = arith.cmpi ne, %40, %c0_i32_23 : i32
      scf.if %41 {
        %45 = tpu.iota {dimensions = array<i32: 0>} : vector<128x1xi32>
        %46 = vector.broadcast %30 : i32 to vector<128x1xi32>
        %47 = arith.addi %46, %45 : vector<128x1xi32>
        %48 = tpu.iota {dimensions = array<i32: 1>} : vector<1x128xi32>
        %49 = vector.broadcast %31 : i32 to vector<1x128xi32>
        %50 = arith.addi %49, %48 : vector<1x128xi32>
        %51 = vector.broadcast %47 : vector<128x1xi32> to vector<128x128xi32>
        %52 = vector.broadcast %50 : vector<1x128xi32> to vector<128x128xi32>
        %53 = arith.cmpi ne, %51, %52 : vector<128x128xi32>
        %c8_i32_25 = arith.constant 8 : i32
        %54 = vector.broadcast %c8_i32_25 : i32 to vector<1x128xi32>
        %55 = arith.cmpi slt, %50, %54 : vector<1x128xi32>
        %56 = vector.broadcast %55 : vector<1x128xi1> to vector<128x128xi1>
        %57 = arith.andi %53, %56 : vector<128x128xi1>
        %c0_26 = arith.constant 0 : index
        %c0_27 = arith.constant 0 : index
        %58 = vector.load %arg11[%c0_26, %c0_27] : memref<128x1xf32, #tpu.memory_space<vmem>>, vector<128x1xf32>
        %59 = arith.mulf %25, %58 : vector<128x1xf32>
        %cst_28 = arith.constant 0.000000e+00 : f32
        %60 = vector.broadcast %cst_28 : f32 to vector<128x128xf32>
        %61 = arith.select %57, %28, %60 : vector<128x128xi1>, vector<128x128xf32>
        %cst_29 = arith.constant dense<0.000000e+00> : vector<128xf32>
        %62 = vector.multi_reduction <add>, %61, %cst_29 [1] : vector<128x128xf32> to vector<128xf32>
        %63 = vector.shape_cast %62 : vector<128xf32> to vector<128x1xf32>
        %64 = arith.addf %59, %63 : vector<128x1xf32>
        %c0_30 = arith.constant 0 : index
        %c0_31 = arith.constant 0 : index
        %65 = vector.load %arg11[%c0_30, %c0_31] : memref<128x1xf32, #tpu.memory_space<vmem>>, vector<128x1xf32>
        tpu.vector_store %arg11[%c0_30, %c0_31], %64 {strides = array<i32>} : memref<128x1xf32, #tpu.memory_space<vmem>>, vector<128x1xf32>,
        %c0_32 = arith.constant 0 : index
        %c0_33 = arith.constant 0 : index
        %66 = vector.load %arg12[%c0_32, %c0_33] : memref<128x1xf32, #tpu.memory_space<vmem>>, vector<128x1xf32>
        %67 = arith.andi %18, %57 : vector<128x128xi1>
        %cst_34 = arith.constant 0.000000e+00 : f32
        %68 = vector.broadcast %cst_34 : f32 to vector<128x128xf32>
        %69 = arith.select %67, %13, %68 : vector<128x128xi1>, vector<128x128xf32>
        %cst_35 = arith.constant dense<0.000000e+00> : vector<128xf32>
        %70 = vector.multi_reduction <add>, %69, %cst_35 [1] : vector<128x128xf32> to vector<128xf32>
        %71 = vector.shape_cast %70 : vector<128xf32> to vector<128x1xf32>
        %72 = arith.addf %66, %71 : vector<128x1xf32>
        %c0_36 = arith.constant 0 : index
        %c0_37 = arith.constant 0 : index
        %73 = vector.load %arg12[%c0_36, %c0_37] : memref<128x1xf32, #tpu.memory_space<vmem>>, vector<128x1xf32>
        tpu.vector_store %arg12[%c0_36, %c0_37], %72 {strides = array<i32>} : memref<128x1xf32, #tpu.memory_space<vmem>>, vector<128x1xf32>,
      } else {
      }
      %true = arith.constant true
      %42 = arith.xori %39, %true : i1
      %43 = arith.extui %42 : i1 to i32
      %c0_i32_24 = arith.constant 0 : i32
      %44 = arith.cmpi ne, %43, %c0_i32_24 : i32
      scf.if %44 {
        %c0_25 = arith.constant 0 : index
        %c0_26 = arith.constant 0 : index
        %45 = vector.load %arg11[%c0_25, %c0_26] : memref<128x1xf32, #tpu.memory_space<vmem>>, vector<128x1xf32>
        %46 = arith.mulf %25, %45 : vector<128x1xf32>
        %cst_27 = arith.constant dense<0.000000e+00> : vector<128xf32>
        %47 = vector.multi_reduction <add>, %28, %cst_27 [1] : vector<128x128xf32> to vector<128xf32>
        %48 = vector.shape_cast %47 : vector<128xf32> to vector<128x1xf32>
        %49 = arith.addf %46, %48 : vector<128x1xf32>
        %c0_28 = arith.constant 0 : index
        %c0_29 = arith.constant 0 : index
        %50 = vector.load %arg11[%c0_28, %c0_29] : memref<128x1xf32, #tpu.memory_space<vmem>>, vector<128x1xf32>
        tpu.vector_store %arg11[%c0_28, %c0_29], %49 {strides = array<i32>} : memref<128x1xf32, #tpu.memory_space<vmem>>, vector<128x1xf32>,
        %c0_30 = arith.constant 0 : index
        %c0_31 = arith.constant 0 : index
        %51 = vector.load %arg12[%c0_30, %c0_31] : memref<128x1xf32, #tpu.memory_space<vmem>>, vector<128x1xf32>
        %cst_32 = arith.constant 0.000000e+00 : f32
        %52 = vector.broadcast %cst_32 : f32 to vector<128x128xf32>
        %53 = arith.select %18, %13, %52 : vector<128x128xi1>, vector<128x128xf32>
        %cst_33 = arith.constant dense<0.000000e+00> : vector<128xf32>
        %54 = vector.multi_reduction <add>, %53, %cst_33 [1] : vector<128x128xf32> to vector<128xf32>
        %55 = vector.shape_cast %54 : vector<128xf32> to vector<128x1xf32>
        %56 = arith.addf %51, %55 : vector<128x1xf32>
        %c0_34 = arith.constant 0 : index
        %c0_35 = arith.constant 0 : index
        %57 = vector.load %arg12[%c0_34, %c0_35] : memref<128x1xf32, #tpu.memory_space<vmem>>, vector<128x1xf32>
        tpu.vector_store %arg12[%c0_34, %c0_35], %56 {strides = array<i32>} : memref<128x1xf32, #tpu.memory_space<vmem>>, vector<128x1xf32>,
      } else {
      }
    } else {
    }
    %c0_i32_1 = arith.constant 0 : i32
    %5 = arith.cmpi eq, %arg1, %c0_i32_1 : i32
    %6 = arith.extui %5 : i1 to i32
    %c0_i32_2 = arith.constant 0 : i32
    %7 = arith.cmpi ne, %6, %c0_i32_2 : i32
    scf.if %7 {
      %8 = arith.extui %2 : i1 to i32
      %c0_i32_3 = arith.constant 0 : i32
      %9 = arith.cmpi ne, %8, %c0_i32_3 : i32
      scf.if %9 {
        %c0 = arith.constant 0 : index
        %c0_5 = arith.constant 0 : index
        %13 = vector.load %arg11[%c0, %c0_5] : memref<128x1xf32, #tpu.memory_space<vmem>>, vector<128x1xf32>
        %14 = math.log %13 : vector<128x1xf32>
        %c0_6 = arith.constant 0 : index
        %c0_7 = arith.constant 0 : index
        %15 = vector.load %arg10[%c0_6, %c0_7] : memref<128x1xf32, #tpu.memory_space<vmem>>, vector<128x1xf32>
        %16 = arith.addf %14, %15 : vector<128x1xf32>
        %c0_8 = arith.constant 0 : index
        %c0_9 = arith.constant 0 : index
        %17 = vector.load %arg6[%c0_8, %c0_9] : memref<128x1xf32, #tpu.memory_space<vmem>>, vector<128x1xf32>
        %c0_10 = arith.constant 0 : index
        %c0_11 = arith.constant 0 : index
        %18 = vector.load %arg5[%c0_10, %c0_11] : memref<128x1xf32, #tpu.memory_space<vmem>>, vector<128x1xf32>
        %cst = arith.constant 0.000000e+00 : f32
        %19 = vector.broadcast %cst : f32 to vector<128x1xf32>
        %20 = arith.cmpf ogt, %18, %19 : vector<128x1xf32>
        %c0_12 = arith.constant 0 : index
        %c0_13 = arith.constant 0 : index
        %21 = vector.load %arg12[%c0_12, %c0_13] : memref<128x1xf32, #tpu.memory_space<vmem>>, vector<128x1xf32>
        %22 = arith.mulf %17, %16 : vector<128x1xf32>
        %23 = arith.subf %21, %22 : vector<128x1xf32>
        %cst_14 = arith.constant 1.000000e+00 : f32
        %24 = vector.broadcast %cst_14 : f32 to vector<128x1xf32>
        %25 = arith.select %20, %17, %24 : vector<128x1xi1>, vector<128x1xf32>
        %26 = arith.divf %23, %25 : vector<128x1xf32>
        %cst_15 = arith.constant 0.000000e+00 : f32
        %27 = vector.broadcast %cst_15 : f32 to vector<128x1xf32>
        %28 = arith.select %20, %26, %27 : vector<128x1xi1>, vector<128x1xf32>
        %29 = vector.shape_cast %28 : vector<128x1xf32> to vector<1x128x1xf32>
        %cst_16 = arith.constant dense<0.000000e+00> : vector<1xf32>
        %30 = vector.multi_reduction <add>, %29, %cst_16 [1, 2] : vector<1x128x1xf32> to vector<1xf32>
        %31 = vector.shape_cast %30 : vector<1xf32> to vector<1x1x1xf32>
        %32 = vector.extract %31[0, 0, 0] : f32 from vector<1x1x1xf32>
        %cst_17 = arith.constant 1.000000e+00 : f32
        %cst_18 = arith.constant 0.000000e+00 : f32
        %33 = vector.broadcast %cst_17 : f32 to vector<128x1xf32>
        %34 = vector.broadcast %cst_18 : f32 to vector<128x1xf32>
        %35 = arith.select %20, %33, %34 : vector<128x1xi1>, vector<128x1xf32>
        %36 = vector.shape_cast %35 : vector<128x1xf32> to vector<1x128x1xf32>
        %cst_19 = arith.constant dense<0.000000e+00> : vector<1xf32>
        %37 = vector.multi_reduction <add>, %36, %cst_19 [1, 2] : vector<1x128x1xf32> to vector<1xf32>
        %38 = vector.shape_cast %37 : vector<1xf32> to vector<1x1x1xf32>
        %39 = vector.extract %38[0, 0, 0] : f32 from vector<1x1x1xf32>
        %40 = tpu.iota {dimensions = array<i32: 0>} : vector<8x128xi32>
        %c0_i32_20 = arith.constant 0 : i32
        %41 = vector.broadcast %c0_i32_20 : i32 to vector<8x128xi32>
        %42 = arith.cmpi eq, %40, %41 : vector<8x128xi32>
        %c1_i32 = arith.constant 1 : i32
        %43 = vector.broadcast %c1_i32 : i32 to vector<8x128xi32>
        %44 = arith.cmpi eq, %40, %43 : vector<8x128xi32>
        %cst_21 = arith.constant 0.000000e+00 : f32
        %45 = vector.broadcast %39 : f32 to vector<8x128xf32>
        %46 = vector.broadcast %cst_21 : f32 to vector<8x128xf32>
        %47 = arith.select %44, %45, %46 : vector<8x128xi1>, vector<8x128xf32>
        %48 = vector.broadcast %32 : f32 to vector<8x128xf32>
        %49 = arith.select %42, %48, %47 : vector<8x128xi1>, vector<8x128xf32>
        %c0_22 = arith.constant 0 : index
        %c0_23 = arith.constant 0 : index
        %c0_24 = arith.constant 0 : index
        %50 = vector.load %arg9[%c0_22, %c0_23, %c0_24] : memref<1x8x128xf32, #tpu.memory_space<vmem>>, vector<1x8x128xf32>
        %51 = vector.shape_cast %50 : vector<1x8x128xf32> to vector<8x128xf32>
        %52 = vector.shape_cast %49 : vector<8x128xf32> to vector<1x8x128xf32>
        tpu.vector_store %arg9[%c0_22, %c0_23, %c0_24], %52 {strides = array<i32>} : memref<1x8x128xf32, #tpu.memory_space<vmem>>, vector<1x8x128xf32>,
      } else {
      }
      %true = arith.constant true
      %10 = arith.xori %2, %true : i1
      %11 = arith.extui %10 : i1 to i32
      %c0_i32_4 = arith.constant 0 : i32
      %12 = arith.cmpi ne, %11, %c0_i32_4 : i32
      scf.if %12 {
        %cst = arith.constant 0.000000e+00 : f32
        %13 = vector.broadcast %cst : f32 to vector<8x128xf32>
        %c0 = arith.constant 0 : index
        %c0_5 = arith.constant 0 : index
        %c0_6 = arith.constant 0 : index
        %14 = vector.load %arg9[%c0, %c0_5, %c0_6] : memref<1x8x128xf32, #tpu.memory_space<vmem>>, vector<1x8x128xf32>
        %15 = vector.shape_cast %14 : vector<1x8x128xf32> to vector<8x128xf32>
        %16 = vector.shape_cast %13 : vector<8x128xf32> to vector<1x8x128xf32>
        tpu.vector_store %arg9[%c0, %c0_5, %c0_6], %16 {strides = array<i32>} : memref<1x8x128xf32, #tpu.memory_space<vmem>>, vector<1x8x128xf32>,
      } else {
      }
    } else {
    }
    return
  }
  func.func @transform_0(%arg0: i32, %arg1: i32, %arg2: memref<1xi32, #tpu.memory_space<smem>>) -> (i32, i32) {
    %c0_i32 = arith.constant 0 : i32
    %c0_i32_0 = arith.constant 0 : i32
    return %arg0, %c0_i32 : i32, i32
  }
  func.func @transform_1(%arg0: i32, %arg1: i32, %arg2: memref<1xi32, #tpu.memory_space<smem>>) -> (i32, i32) {
    %c0_i32 = arith.constant 0 : i32
    %c0_i32_0 = arith.constant 0 : i32
    return %c0_i32, %arg1 : i32, i32
  }
  func.func @transform_2(%arg0: i32, %arg1: i32, %arg2: memref<1xi32, #tpu.memory_space<smem>>) -> (i32, i32) {
    %c0_i32 = arith.constant 0 : i32
    %c0_i32_0 = arith.constant 0 : i32
    return %arg0, %c0_i32 : i32, i32
  }
  func.func @transform_3(%arg0: i32, %arg1: i32, %arg2: memref<1xi32, #tpu.memory_space<smem>>) -> (i32, i32) {
    %c0_i32 = arith.constant 0 : i32
    %c0_i32_0 = arith.constant 0 : i32
    return %arg0, %c0_i32 : i32, i32
  }
  func.func @transform_4(%arg0: i32, %arg1: i32, %arg2: memref<1xi32, #tpu.memory_space<smem>>) -> (i32, i32) {
    %0 = arith.index_cast %arg0 : i32 to index
    %1 = memref.load %arg2[%0] : memref<1xi32, #tpu.memory_space<smem>>
    %2 = arith.muli %arg0, %1 : i32
    %c0_i32 = arith.constant 0 : i32
    %c0_i32_0 = arith.constant 0 : i32
    return %2, %c0_i32 : i32, i32
  }
  func.func @transform_5(%arg0: i32, %arg1: i32, %arg2: memref<1xi32, #tpu.memory_space<smem>>) -> (i32, i32) {
    %0 = arith.index_cast %arg0 : i32 to index
    %1 = memref.load %arg2[%0] : memref<1xi32, #tpu.memory_space<smem>>
    %2 = arith.muli %arg1, %1 : i32
    %c0_i32 = arith.constant 0 : i32
    %c0_i32_0 = arith.constant 0 : i32
    return %2, %c0_i32 : i32, i32
  }
  func.func @transform_6(%arg0: i32, %arg1: i32, %arg2: memref<1xi32, #tpu.memory_space<smem>>) -> (i32, i32, i32) {
    %c0_i32 = arith.constant 0 : i32
    %c0_i32_0 = arith.constant 0 : i32
    %c0_i32_1 = arith.constant 0 : i32
    return %arg0, %c0_i32, %c0_i32_0 : i32, i32, i32
  }
}

</mosaic_0001>

<bundles_post_ra>
// kernel: tpu_custom_call.1
= control target key start
LH: loop header
LB: loop body
LE: loop exit
PB: predicated region body
PF: predicated region fallthrough
CT: control target
= control target key end

     0   :  { %13 = vsyncpa [#allocation8], 0  ;;  %s3132_s0 = inlined_call_operand.<no memory space> [shape: s32[1], index: 0, kind: input, shape index: {}]   ;;  %s3133_s1 = inlined_call_operand.vmem [shape: s32[128,1], index: 1, kind: input, shape index: {}]   ;;  %s3134_s2 = inlined_call_operand.vmem [shape: s32[1,128], index: 2, kind: input, shape index: {}]   ;;  %s3135_s3 = inlined_call_operand.vmem [shape: f32[128,1], index: 3, kind: input, shape index: {}]   ;;  %s3136_s4 = inlined_call_operand.vmem [shape: f32[128,1], index: 4, kind: input, shape index: {}]   ;;  %s3137_s5 = inlined_call_operand.vmem [shape: bf16[128,128], index: 5, kind: input, shape index: {}]   ;;  %s3138_s6 = inlined_call_operand.vmem [shape: bf16[128,128], index: 6, kind: input, shape index: {}]   ;;  %s3139_s7 = inlined_call_operand.hbm [shape: f32[1,8,128], index: 7, kind: output, shape index: {}]  }
   0x1   :  { %p1595_p0 = scmp.le.s32.totalorder %s3132_s0, 0 }
   0x3   :  { %85 = sbr.rel (%p1595_p0) target bundleno = 821 (0x335), region = 29 }
   0xa   :  { %v1691_v0 = vld [vmem:[%s3138_s6] sm:$0xff]   ;;  %v1692_v1 = vld [vmem:[%s3138_s6 + $0x8] sm:$0xff]   ;;  %v1859_v2 = vmov 0   ;;  %v1693_v3 = vld [vmem:[%s3138_s6 + $0x10] sm:$0xff]   ;;  %v719_v28 = vlaneseq  ;;  %v3168_v37 = vmov 0  ;;  %v3170_v39 = vmov 0 }
   0xb   :  { %1689 = vset.pattern.permute.xlu0 %v1859_v2  ;;  %1690 = vset.pattern.permute.xlu1 %v1859_v2  ;;  %v1699_v4 = vld [vmem:[%s3137_s5] sm:$0xff]   ;;  %v1694_v6 = vld [vmem:[%s3138_s6 + $0x18] sm:$0xff]   ;;  %v366_v8 = vld [vmem:[%s3133_s1 + $0x10] sm:$0xff]  ;;  %v3180_v57 = vmov 0  ;;  %v3182_v58 = vmov 0  ;;  %v1860_v60 = vmov -inf  }
   0xc   :  { %1631 = vmatprep.subr.bf16.mxu0 %v1691_v0  ;;  %1663 = vmatprep.subr.bf16.mxu1 %v1691_v0  ;;  %v1701_v5 = vld [vmem:[%s3137_s5 + $0x20] sm:$0xff]   ;;  %v365_v9 = vld [vmem:[%s3133_s1 + $0x8] sm:$0xff]  ;;  %v367_v10 = vld [vmem:[%s3133_s1 + $0x18] sm:$0xff]  ;;  %v1991_v30 = vshrl.u32 %v719_v28, 7  ;;  %v1993_v31 = vand.u32 127, %v719_v28 }
   0xd   :  { %1632 = vmatpush3.bf16.xpose.msra.mxu0 %v1691_v0  ;;  %1671 = vmatpush3.bf16.xpose.msra.mxu1 %v1691_v0  ;;  %v364_v7 = vld [vmem:[%s3133_s1] sm:$0xff]  ;;  %v369_v12 = vld [vmem:[%s3133_s1 + $0x28] sm:$0xff]  ;;  %v370_v14 = vld [vmem:[%s3133_s1 + $0x30] sm:$0xff] }
   0xe   :  { %1633 = vmatprep.subr.bf16.mxu0 %v1692_v1  ;;  %1664 = vmatprep.subr.bf16.mxu1 %v1692_v1  ;;  %v368_v11 = vld [vmem:[%s3133_s1 + $0x20] sm:$0xff]  ;;  %v1696_v16 = vld [vmem:[%s3138_s6 + $0x28] sm:$0xff]   ;;  %v374_v17 = vld [vmem:[%s3133_s1 + $0x50] sm:$0xff]  ;;  %v722_v32 = vadd.s32 16, %v1991_v30  ;;  %v728_v34 = vadd.s32 64, %v1991_v30  ;;  %vm773_vm0 = vcmp.lt.s32.totalorder %v1993_v31, 8  ;;  %vm757_vm1 = vcmp.ne.s32.totalorder %v1991_v30, %v1993_v31 }
   0xf   :  { %1647 = vmatprep.mubr.bf16.mxu0 %v1699_v4  ;;  %1655 = vmatprep.mubr.bf16.mxu1 %v1701_v5  ;;  %v1695_v13 = vld [vmem:[%s3138_s6 + $0x20] sm:$0xff]   ;;  %v1697_v18 = vld [vmem:[%s3138_s6 + $0x30] sm:$0xff]   ;;  %v1698_v19 = vld [vmem:[%s3138_s6 + $0x38] sm:$0xff]   ;;  %v726_v40 = vadd.s32 48, %v1991_v30  ;;  %v724_v43 = vadd.s32 32, %v1991_v30  ;;  %v727_v53 = vadd.s32 56, %v1991_v30 }
  0x10   :  { %382 = vperm.xlu0 %1689, %v364_v7   ;;  %388 = vperm.xlu1 %1690, %v366_v8   ;;  %v372_v15 = vld [vmem:[%s3133_s1 + $0x40] sm:$0xff]  ;;  %v1700_v20 = vld [vmem:[%s3137_s5 + $0x8] sm:$0xff]   ;;  %v1703_v22 = vld [vmem:[%s3137_s5 + $0x10] sm:$0xff]   ;;  %vm759_vm2 = vcmp.ne.s32.totalorder %v722_v32, %v1993_v31  ;;  %vm765_vm3 = vcmp.ne.s32.totalorder %v728_v34, %v1993_v31  ;;  %v1861_v8 = vmov 0.0  }
  0x11   :  { %v1702_v21 = vld [vmem:[%s3137_s5 + $0x28] sm:$0xff]   ;;  %v1705_v23 = vld [vmem:[%s3137_s5 + $0x30] sm:$0xff]   ;;  %v1704_v24 = vld [vmem:[%s3137_s5 + $0x18] sm:$0xff]   ;;  %vm763_vm13 = vcmp.ne.s32.totalorder %v726_v40, %v1993_v31  ;;  %vm761_vm14 = vcmp.ne.s32.totalorder %v724_v43, %v1993_v31 }
  0x12   :  { %v1706_v25 = vld [vmem:[%s3137_s5 + $0x38] sm:$0xff]   ;;  %v2000_v35 = vld [vmem:[%s3134_s2] ss:$0 sm:$0xff]  ;;  %vm2010_vm5 = vmand %vm757_vm1, %vm773_vm0 }
  0x13   :  { %v3169_v37 = vsel %vm2010_vm5, 4294967295, %v3168_v37  ;;  %vm2017_vm7 = vmand %vm759_vm2, %vm773_vm0 }
  0x14   :  { %385 = vperm.xlu0 %1689, %v365_v9   ;;  %391 = vperm.xlu1 %1690, %v367_v10   ;;  %v3171_v39 = vsel %vm2017_vm7, 4294967295, %v3170_v39  ;;  %vm2025_vm9 = vmand %vm765_vm3, %vm773_vm0  ;;  %v371_v9 = vld [vmem:[%s3133_s1 + $0x38] sm:$0xff] }
  0x15   :  { %1634 = vmatpush3.bf16.xpose.msra.mxu0 %v1692_v1  ;;  %1672 = vmatpush3.bf16.xpose.msra.mxu1 %v1692_v1  ;;  %vm2080_vm1 = vmand %vm763_vm13, %vm773_vm0  ;;  %v375_v10 = vld [vmem:[%s3133_s1 + $0x58] sm:$0xff] }
  0x16   :  { %1635 = vmatprep.subr.bf16.mxu0 %v1693_v3  ;;  %1665 = vmatprep.subr.bf16.mxu1 %v1693_v3  ;;  %v3181_v57 = vsel %vm2080_vm1, 4294967295, %v3180_v57  ;;  %vm2088_vm3 = vmand %vm761_vm14, %vm773_vm0 }
  0x17   :  { %v3183_v58 = vsel %vm2088_vm3, 4294967295, %v3182_v58 }
  0x18   :  { %394 = vperm.xlu0 %1689, %v368_v11   ;;  %397 = vperm.xlu1 %1690, %v369_v12   ;;  %v373_v11 = vld [vmem:[%s3133_s1 + $0x48] sm:$0xff]  ;;  %v376_v12 = vld [vmem:[%s3133_s1 + $0x60] sm:$0xff] }
  0x1c   :  { %400 = vperm.xlu0 %1689, %v370_v14   ;;  %v723_v14 = vadd.s32 24, %v1991_v30 }
  0x1d   :  { %1636 = vmatpush3.bf16.xpose.msra.mxu0 %v1693_v3  ;;  %1673 = vmatpush3.bf16.xpose.msra.mxu1 %v1693_v3 }
  0x1e   :  { %1637 = vmatprep.subr.bf16.mxu0 %v1694_v6  ;;  %1666 = vmatprep.subr.bf16.mxu1 %v1694_v6 }
  0x20   :  { %406 = vperm.xlu0 %1689, %v372_v15  }
  0x24   :  { %412 = vperm.xlu0 %1689, %v374_v17   ;;  %v725_v17 = vadd.s32 40, %v1991_v30 }
  0x25   :  { %1638 = vmatpush3.bf16.xpose.msra.mxu0 %v1694_v6  ;;  %1674 = vmatpush3.bf16.xpose.msra.mxu1 %v1694_v6 }
  0x26   :  { %1639 = vmatprep.subr.bf16.mxu0 %v1695_v13  ;;  %1667 = vmatprep.subr.bf16.mxu1 %v1695_v13 }
  0x2d   :  { %1640 = vmatpush3.bf16.xpose.msra.mxu0 %v1695_v13  ;;  %1675 = vmatpush3.bf16.xpose.msra.mxu1 %v1695_v13  ;;  %v721_v13 = vadd.s32 8, %v1991_v30 }
  0x2e   :  { %1641 = vmatprep.subr.bf16.mxu0 %v1696_v16  ;;  %1668 = vmatprep.subr.bf16.mxu1 %v1696_v16 }
  0x2f   :  { %vm758_vm13 = vcmp.ne.s32.totalorder %v721_v13, %v1993_v31 }
  0x35   :  { %1642 = vmatpush3.bf16.xpose.msra.mxu0 %v1696_v16  ;;  %1676 = vmatpush3.bf16.xpose.msra.mxu1 %v1696_v16 }
  0x36   :  { %1643 = vmatprep.subr.bf16.mxu0 %v1697_v18  ;;  %1669 = vmatprep.subr.bf16.mxu1 %v1697_v18 }
  0x3d   :  { %1644 = vmatpush3.bf16.xpose.msra.mxu0 %v1697_v18  ;;  %1677 = vmatpush3.bf16.xpose.msra.mxu1 %v1697_v18 }
  0x3e   :  { %1645 = vmatprep.subr.bf16.mxu0 %v1698_v19  ;;  %1670 = vmatprep.subr.bf16.mxu1 %v1698_v19 }
  0x45   :  { %1646 = vmatpush3.bf16.xpose.msra.mxu0 %v1698_v19  ;;  %1678 = vmatpush3.bf16.xpose.msra.mxu1 %v1698_v19 }
  0x4c   :  { %1648 = vmatmul.mubr.bf16.vlgmr.msra.gmra.mrb[0].mxu0 %v1700_v20  ;;  %1656 = vmatmul.mubr.bf16.vlgmr.msra.gmra.mrb[0].mxu1 %v1702_v21  ;;  %v3192_v21 = vmov 0 }
  0x4d   :  { %1651 = vmatprep.mubr.bf16.mxu0 %v1703_v22  ;;  %1659 = vmatprep.mubr.bf16.mxu1 %v1705_v23 }
  0x54   :  { %1652 = vmatmul.mubr.bf16.gmra.mrb[4].mxu0 %v1704_v24  ;;  %1660 = vmatmul.mubr.bf16.gmra.mrb[4].mxu1 %v1706_v25 }
  0x8f   :  { %v383_v26 = vpop.permute.xlu0 %382  ;;  %v389_v36 = vpop.permute.xlu1 %388 }
  0x90   :  { %vm433_vm4 = vcmp.eq.s32.totalorder %v383_v26, %v2000_v35  ;;  %vm435_vm6 = vcmp.eq.s32.totalorder %v389_v36, %v2000_v35 }
  0x91   :  { %vm2031_vm10 = vmand %vm433_vm4, %vm2010_vm5  ;;  %vm3140_vm4 = vcmask 7168  }
  0x92   :  { %vm2038_vm11 = vmand %vm435_vm6, %vm2017_vm7  ;;  %93 = vst.msk [vmem:[#allocation2 + $0x10] sm:$0xff] %vm3140_vm4, %v1860_v60 }
  0x93   :  { %v1987_v27 = vpop.permute.xlu0 %385  ;;  %91 = vst.msk [vmem:[#allocation2] sm:$0xff] %vm3140_vm4, %v1860_v60  ;;  %92 = vst.msk [vmem:[#allocation2 + $0x8] sm:$0xff] %vm3140_vm4, %v1860_v60  ;;  %v392_v16 = vpop.permute.xlu1 %391 }
  0x94   :  { %94 = vst.msk [vmem:[#allocation2 + $0x18] sm:$0xff] %vm3140_vm4, %v1860_v60  ;;  %95 = vst.msk [vmem:[#allocation2 + $0x20] sm:$0xff] %vm3140_vm4, %v1860_v60  ;;  %vm434_vm14 = vcmp.eq.s32.totalorder %v1987_v27, %v2000_v35 }
  0x95   :  { %96 = vst.msk [vmem:[#allocation2 + $0x28] sm:$0xff] %vm3140_vm4, %v1860_v60  ;;  %97 = vst.msk [vmem:[#allocation2 + $0x30] sm:$0xff] %vm3140_vm4, %v1860_v60 }
  0x96   :  { %98 = vst.msk [vmem:[#allocation2 + $0x38] sm:$0xff] %vm3140_vm4, %v1860_v60  ;;  %99 = vst.msk [vmem:[#allocation2 + $0x40] sm:$0xff] %vm3140_vm4, %v1860_v60 }
  0x97   :  { %v1989_v29 = vpop.permute.xlu0 %394  ;;  %100 = vst.msk [vmem:[#allocation2 + $0x48] sm:$0xff] %vm3140_vm4, %v1860_v60  ;;  %101 = vst.msk [vmem:[#allocation2 + $0x50] sm:$0xff] %vm3140_vm4, %v1860_v60  ;;  %v398_v19 = vpop.permute.xlu1 %397 }
  0x98   :  { %vm437_vm2 = vcmp.eq.s32.totalorder %v1989_v29, %v2000_v35  ;;  %102 = vst.msk [vmem:[#allocation2 + $0x58] sm:$0xff] %vm3140_vm4, %v1860_v60  ;;  %103 = vst.msk [vmem:[#allocation2 + $0x60] sm:$0xff] %vm3140_vm4, %v1860_v60  ;;  %vm438_vm7 = vcmp.eq.s32.totalorder %v398_v19, %v2000_v35 }
  0x99   :  { %104 = vst.msk [vmem:[#allocation2 + $0x68] sm:$0xff] %vm3140_vm4, %v1860_v60  ;;  %105 = vst.msk [vmem:[#allocation2 + $0x70] sm:$0xff] %vm3140_vm4, %v1860_v60  ;;  %v2242_v25 = vld [vmem:[#allocation2 + $0x10] sm:$0xff] }
  0x9a   :  { %106 = vst.msk [vmem:[#allocation2 + $0x78] sm:$0xff] %vm3140_vm4, %v1860_v60  ;;  %124 = vst.msk [vmem:[#allocation4 + $0x8] sm:$0xff] %vm3140_vm4, %v1861_v8  ;;  %v2244_v26 = vld [vmem:[#allocation2] sm:$0xff]  ;;  %v2290_v19 = vld [vmem:[#allocation2 + $0x8] sm:$0xff] }
  0x9b   :  { %v401_v33 = vpop.permute.xlu0 %400  ;;  %107 = vst.msk [vmem:[#allocation3] sm:$0xff] %vm3140_vm4, %v1861_v8  ;;  %108 = vst.msk [vmem:[#allocation3 + $0x8] sm:$0xff] %vm3140_vm4, %v1861_v8  ;;  %v2259_v36 = vld [vmem:[#allocation2 + $0x18] sm:$0xff]  ;;  %v2343_v2 = vld [vmem:[#allocation2 + $0x20] sm:$0xff] }
  0x9c   :  { %vm439_vm15 = vcmp.eq.s32.totalorder %v401_v33, %v2000_v35  ;;  %109 = vst.msk [vmem:[#allocation3 + $0x10] sm:$0xff] %vm3140_vm4, %v1861_v8  ;;  %110 = vst.msk [vmem:[#allocation3 + $0x18] sm:$0xff] %vm3140_vm4, %v1861_v8  ;;  %v2350_v5 = vld [vmem:[#allocation2 + $0x28] sm:$0xff] }
  0x9d   :  { %vm2096_vm6 = vmand %vm439_vm15, %vm2080_vm1  ;;  %111 = vst.msk [vmem:[#allocation3 + $0x20] sm:$0xff] %vm3140_vm4, %v1861_v8 }
  0x9e   :  { %112 = vst.msk [vmem:[#allocation3 + $0x28] sm:$0xff] %vm3140_vm4, %v1861_v8  ;;  %113 = vst.msk [vmem:[#allocation3 + $0x30] sm:$0xff] %vm3140_vm4, %v1861_v8  ;;  %v2252_v33 = vld [vmem:[#allocation2 + $0x50] sm:$0xff] }
  0x9f   :  { %v407_v38 = vpop.permute.xlu0 %406  ;;  %114 = vst.msk [vmem:[#allocation3 + $0x38] sm:$0xff] %vm3140_vm4, %v1861_v8  ;;  %115 = vst.msk [vmem:[#allocation3 + $0x40] sm:$0xff] %vm3140_vm4, %v1861_v8 }
  0xa0   :  { %vm441_vm8 = vcmp.eq.s32.totalorder %v407_v38, %v2000_v35  ;;  %116 = vst.msk [vmem:[#allocation3 + $0x48] sm:$0xff] %vm3140_vm4, %v1861_v8  ;;  %117 = vst.msk [vmem:[#allocation3 + $0x50] sm:$0xff] %vm3140_vm4, %v1861_v8  ;;  %v2326_v34 = vld [vmem:[#allocation2 + $0x70] sm:$0xff] }
  0xa1   :  { %vm2044_vm12 = vmand %vm441_vm8, %vm2025_vm9  ;;  %118 = vst.msk [vmem:[#allocation3 + $0x58] sm:$0xff] %vm3140_vm4, %v1861_v8 }
  0xa2   :  { %vm2121_vm8 = vmand %vm437_vm2, %vm2088_vm3  ;;  %119 = vst.msk [vmem:[#allocation3 + $0x60] sm:$0xff] %vm3140_vm4, %v1861_v8  ;;  %vm760_vm2 = vcmp.ne.s32.totalorder %v723_v14, %v1993_v31  ;;  %vm436_vm3 = vcmp.eq.s32.totalorder %v392_v16, %v2000_v35 }
  0xa3   :  { %120 = vst.msk [vmem:[#allocation3 + $0x68] sm:$0xff] %vm3140_vm4, %v1861_v8  ;;  %121 = vst.msk [vmem:[#allocation3 + $0x70] sm:$0xff] %vm3140_vm4, %v1861_v8  ;;  %v2240_v24 = vpop.permute.xlu0 %412 }
  0xa4   :  { %122 = vst.msk [vmem:[#allocation3 + $0x78] sm:$0xff] %vm3140_vm4, %v1861_v8  ;;  %123 = vst.msk [vmem:[#allocation4] sm:$0xff] %vm3140_vm4, %v1861_v8 }
  0xa5   :  { %125 = vst.msk [vmem:[#allocation4 + $0x10] sm:$0xff] %vm3140_vm4, %v1861_v8  ;;  %126 = vst.msk [vmem:[#allocation4 + $0x18] sm:$0xff] %vm3140_vm4, %v1861_v8 }
  0xa6   :  { %127 = vst.msk [vmem:[#allocation4 + $0x20] sm:$0xff] %vm3140_vm4, %v1861_v8  ;;  %128 = vst.msk [vmem:[#allocation4 + $0x28] sm:$0xff] %vm3140_vm4, %v1861_v8 }
  0xa7   :  { %129 = vst.msk [vmem:[#allocation4 + $0x30] sm:$0xff] %vm3140_vm4, %v1861_v8  ;;  %130 = vst.msk [vmem:[#allocation4 + $0x38] sm:$0xff] %vm3140_vm4, %v1861_v8 }
  0xa8   :  { %131 = vst.msk [vmem:[#allocation4 + $0x40] sm:$0xff] %vm3140_vm4, %v1861_v8  ;;  %132 = vst.msk [vmem:[#allocation4 + $0x48] sm:$0xff] %vm3140_vm4, %v1861_v8 }
  0xa9   :  { %133 = vst.msk [vmem:[#allocation4 + $0x50] sm:$0xff] %vm3140_vm4, %v1861_v8  ;;  %134 = vst.msk [vmem:[#allocation4 + $0x58] sm:$0xff] %vm3140_vm4, %v1861_v8 }
  0xaa   :  { %135 = vst.msk [vmem:[#allocation4 + $0x60] sm:$0xff] %vm3140_vm4, %v1861_v8  ;;  %136 = vst.msk [vmem:[#allocation4 + $0x68] sm:$0xff] %vm3140_vm4, %v1861_v8 }
  0xab   :  { %137 = vst.msk [vmem:[#allocation4 + $0x70] sm:$0xff] %vm3140_vm4, %v1861_v8  ;;  %138 = vst.msk [vmem:[#allocation4 + $0x78] sm:$0xff] %vm3140_vm4, %v1861_v8 }
  0xac   :  { %vm2210_vm15 = vmand %vm758_vm13, %vm773_vm0  ;;  %vm762_vm13 = vcmp.ne.s32.totalorder %v725_v17, %v1993_v31  ;;  %3205 = vst [vmem:[#allocation13_spill] sm:$0xff] %v2326_v34 }
  0xad   :  { %vm921_vm4 = vmand %vm434_vm14, %vm2210_vm15  ;;  %3210 = vst [vmem:[#allocation16_spill] sm:$0xff] %v2343_v2  ;;  %v909_v61 = vld [vmem:[#allocation4 + $0x28] sm:$0xff] }
  0xae   :  { %vm2221_vm1 = vmand %vm760_vm2, %vm773_vm0  ;;  %3212 = vst [vmem:[#allocation17_spill] sm:$0xff] %v2350_v5 }
  0xaf   :  { %vm923_vm5 = vmand %vm436_vm3, %vm2221_vm1 }
  0xb0   :  { %vm2232_vm14 = vmand %vm762_vm13, %vm773_vm0 }
  0xb1   :  { %v3193_v21 = vsel %vm2232_vm14, 4294967295, %v3192_v21  ;;  %vm925_vm2 = vmand %vm438_vm7, %vm2232_vm14 }
 0x11f   :  { %v2048_v46 = vpop.f32.mrb[0].mxu0  ;;  %v2050_v47 = vpop.f32.mrb[0].mxu1 }
 0x120   :  { %469 = vmax.xlane.f32.xlu0 %v2048_v46  ;;  %v2054_v48 = vpop.f32.mrb[1].mxu0  ;;  %v2056_v49 = vpop.f32.mrb[1].mxu1 }
 0x121   :  { %465 = vmax.xlane.f32.xlu1 %v2054_v48  ;;  %v2063_v51 = vpop.f32.mrb[2].mxu0  ;;  %v2065_v52 = vpop.f32.mrb[2].mxu1 }
 0x122   :  { %v2074_v55 = vpop.f32.mrb[3].mxu0  ;;  %v2076_v56 = vpop.f32.mrb[3].mxu1  ;;  %v939_v22 = vsel %vm923_vm5, %v2063_v51, 0.0  ;;  %vm3194_vm5 = vcmask 7168  }
 0x123   :  { %v937_v20 = vsel %vm921_vm4, %v2074_v55, 0.0  ;;  %vm3195_vm7 = vmmov %vm3194_vm5 }
 0x124   :  { %485 = vmax.xlane.f32.xlu0 %v2050_v47  ;;  %vm3196_vm3 = vmmov %vm3194_vm5 }
 0x125   :  { %471 = vmax.xlane.f32.xlu1 %v2063_v51  ;;  %vm3197_vm4 = vmmov %vm3196_vm3 }
 0x126   :  { %vm3198_vm13 = vmmov %vm3196_vm3 }
 0x127   :  { %v2125_v62 = vpop.f32.mrb[4].mxu0  ;;  %v2127_v63 = vpop.f32.mrb[4].mxu1 }
 0x128   :  { %481 = vmax.xlane.f32.xlu0 %v2056_v49  ;;  %v2130_v0 = vpop.f32.mrb[5].mxu0  ;;  %v2132_v1 = vpop.f32.mrb[5].mxu1 }
 0x129   :  { %487 = vmax.xlane.f32.xlu1 %v2065_v52  ;;  %v2138_v3 = vpop.f32.mrb[6].mxu0  ;;  %v2140_v4 = vpop.f32.mrb[6].mxu1  ;;  %v3231_v42 = vsel %vm2121_vm8, %v2130_v0, 0.0  ;;  %vm443_vm8 = vcmp.eq.s32.totalorder %v2240_v24, %v2000_v35 }
 0x12a   :  { %v2145_v6 = vpop.f32.mrb[7].mxu0  ;;  %v2147_v7 = vpop.f32.mrb[7].mxu1 }
 0x12b   :  { %v941_v23 = vsel %vm925_vm2, %v2145_v6, 0.0  ;;  %vm3200_vm2 = vmmov %vm3196_vm3 }
 0x12c   :  { %467 = vmax.xlane.f32.xlu0 %v2074_v55 }
 0x12d   :  { %483 = vmax.xlane.f32.xlu1 %v2076_v56 }
 0x130   :  { %477 = vmax.xlane.f32.xlu0 %v2125_v62 }
 0x131   :  { %479 = vmax.xlane.f32.xlu1 %v2138_v3 }
 0x134   :  { %493 = vmax.xlane.f32.xlu0 %v2127_v63 }
 0x135   :  { %495 = vmax.xlane.f32.xlu1 %v2140_v4 }
 0x138   :  { %473 = vmax.xlane.f32.xlu0 %v2130_v0 }
 0x139   :  { %475 = vmax.xlane.f32.xlu1 %v2145_v6 }
 0x13c   :  { %489 = vmax.xlane.f32.xlu0 %v2132_v1 }
 0x13d   :  { %491 = vmax.xlane.f32.xlu1 %v2147_v7 }
 0x14e   :  { %403 = vperm.xlu1 %1690, %v371_v9   ;;  %v2271_v9 = vld [vmem:[#allocation2 + $0x40] sm:$0xff] }
 0x152   :  { %415 = vperm.xlu0 %1689, %v375_v10   ;;  %409 = vperm.xlu1 %1690, %v373_v11   ;;  %v2278_v11 = vld [vmem:[#allocation2 + $0x58] sm:$0xff] }
 0x156   :  { %418 = vperm.xlu1 %1690, %v376_v12  }
 0x171   :  { %954 = vadd.xlane.f32.xlu0 %v937_v20  ;;  %v2361_v20 = vld [vmem:[#allocation2 + $0x60] sm:$0xff] }
 0x172   :  { %3215 = vst [vmem:[#allocation20_spill] sm:$0xff] %v2361_v20 }
 0x175   :  { %958 = vadd.xlane.f32.xlu0 %v939_v22  ;;  %v2297_v22 = vld [vmem:[#allocation2 + $0x48] sm:$0xff] }
 0x176   :  { %3199 = vst [vmem:[#allocation10_spill] sm:$0xff] %v2297_v22 }
 0x179   :  { %962 = vadd.xlane.f32.xlu0 %v941_v23 }
 0x1ad   :  { %v470_v27 = vpop.xlane.xlu0 %469 }
 0x1ae   :  { %v2247_v28 = vmax.f32 %v2242_v25, %v470_v27  ;;  %v466_v29 = vpop.xlane.xlu1 %465 }
 0x1af   :  { %v2250_v32 = vmax.f32 %v2244_v26, %v466_v29 }
 0x1b0   :  { %692 = vst.msk [vmem:[#allocation2 + $0x10] sm:$0xff] %vm3194_vm5, %v2247_v28  ;;  %573 = vperm.xlu1 %1690, %v2247_v28   ;;  %vm3202_vm5 = vmmov %vm3200_vm2 }
 0x1b1   :  { %690 = vst.msk [vmem:[#allocation2] sm:$0xff] %vm3195_vm7, %v2250_v32  ;;  %v486_v40 = vpop.xlane.xlu0 %485  ;;  %vm3204_vm7 = vmmov %vm3200_vm2 }
 0x1b2   :  { %v2266_v43 = vmax.f32 %v2252_v33, %v486_v40  ;;  %v472_v60 = vpop.xlane.xlu1 %471 }
 0x1b3   :  { %v2269_v8 = vmax.f32 %v2259_v36, %v472_v60  ;;  %v2307_v60 = vld [vmem:[#allocation2 + $0x30] sm:$0xff] }
 0x1b4   :  { %700 = vst.msk [vmem:[#allocation2 + $0x50] sm:$0xff] %vm3196_vm3, %v2266_v43  ;;  %613 = vperm.xlu1 %1690, %v2266_v43   ;;  %vm3206_vm3 = vmmov %vm3200_vm2 }
 0x1b5   :  { %693 = vst.msk [vmem:[#allocation2 + $0x18] sm:$0xff] %vm3197_vm4, %v2269_v8  ;;  %v482_v13 = vpop.xlane.xlu0 %481  ;;  %vm3208_vm4 = vmmov %vm3200_vm2 }
 0x1b6   :  { %v2285_v14 = vmax.f32 %v2271_v9, %v482_v13  ;;  %v488_v16 = vpop.xlane.xlu1 %487 }
 0x1b7   :  { %v2288_v17 = vmax.f32 %v2278_v11, %v488_v16  ;;  %v2314_v16 = vld [vmem:[#allocation2 + $0x38] sm:$0xff] }
 0x1b8   :  { %698 = vst.msk [vmem:[#allocation2 + $0x40] sm:$0xff] %vm3198_vm13, %v2285_v14  ;;  %563 = vperm.xlu1 %1690, %v2250_v32   ;;  %3203 = vst [vmem:[#allocation12_spill] sm:$0xff] %v2314_v16 }
 0x1b9   :  { %701 = vst.msk [vmem:[#allocation2 + $0x58] sm:$0xff] %vm3200_vm2, %v2288_v17  ;;  %v468_v23 = vpop.xlane.xlu0 %467  ;;  %vm3211_vm13 = vmmov %vm3200_vm2 }
 0x1ba   :  { %v2302_v27 = vmax.f32 %v2290_v19, %v468_v23  ;;  %v484_v29 = vpop.xlane.xlu1 %483  ;;  %v2333_v23 = vld [vmem:[#allocation2 + $0x78] sm:$0xff] }
 0x1bb   :  { %v2305_v40 = vmax.f32 %v2297_v22, %v484_v29  ;;  %3207 = vst [vmem:[#allocation14_spill] sm:$0xff] %v2333_v23  ;;  %v2368_v22 = vld [vmem:[#allocation2 + $0x68] sm:$0xff] }
 0x1bc   :  { %691 = vst.msk [vmem:[#allocation2 + $0x8] sm:$0xff] %vm3202_vm5, %v2302_v27  ;;  %603 = vperm.xlu1 %1690, %v2285_v14   ;;  %vm3216_vm5 = vmmov %vm3200_vm2 }
 0x1bd   :  { %3201 = vst [vmem:[#allocation11_spill] sm:$0xff] %v2305_v40  ;;  %699 = vst.msk [vmem:[#allocation2 + $0x48] sm:$0xff] %vm3204_vm7, %v2305_v40  ;;  %v478_v29 = vpop.xlane.xlu0 %477 }
 0x1be   :  { %v2321_v12 = vmax.f32 %v2307_v60, %v478_v29  ;;  %v480_v38 = vpop.xlane.xlu1 %479  ;;  %3217 = vst [vmem:[#allocation21_spill] sm:$0xff] %v2368_v22  ;;  %vm3218_vm7 = vmmov %vm3200_vm2 }
 0x1bf   :  { %v2324_v13 = vmax.f32 %v2314_v16, %v480_v38 }
 0x1c0   :  { %696 = vst.msk [vmem:[#allocation2 + $0x30] sm:$0xff] %vm3206_vm3, %v2321_v12  ;;  %593 = vperm.xlu1 %1690, %v2321_v12   ;;  %vm764_vm3 = vcmp.ne.s32.totalorder %v727_v53, %v1993_v31  ;;  %v377_v53 = vld [vmem:[%s3133_s1 + $0x68] sm:$0xff] }
 0x1c1   :  { %697 = vst.msk [vmem:[#allocation2 + $0x38] sm:$0xff] %vm3208_vm4, %v2324_v13  ;;  %v494_v29 = vpop.xlane.xlu0 %493  ;;  %vm3221_vm4 = vmmov %vm3200_vm2 }
 0x1c2   :  { %v2338_v10 = vmax.f32 %v2326_v34, %v494_v29  ;;  %v496_v38 = vpop.xlane.xlu1 %495 }
 0x1c3   :  { %v2341_v54 = vmax.f32 %v2333_v23, %v496_v38 }
 0x1c4   :  { %3209 = vst [vmem:[#allocation15_spill] sm:$0xff] %v2338_v10  ;;  %704 = vst.msk [vmem:[#allocation2 + $0x70] sm:$0xff] %vm3211_vm13, %v2338_v10  ;;  %633 = vperm.xlu1 %1690, %v2338_v10  }
 0x1c5   :  { %705 = vst.msk [vmem:[#allocation2 + $0x78] sm:$0xff] %vm3200_vm2, %v2341_v54  ;;  %v474_v29 = vpop.xlane.xlu0 %473  ;;  %vm3222_vm13 = vmmov %vm3200_vm2 }
 0x1c6   :  { %v2355_v50 = vmax.f32 %v2343_v2, %v474_v29  ;;  %v476_v38 = vpop.xlane.xlu1 %475  ;;  %v731_v2 = vadd.s32 88, %v1991_v30  ;;  %vm2393_vm2 = vmand %vm764_vm3, %vm773_vm0 }
 0x1c7   :  { %v2359_v23 = vmax.f32 %v2350_v5, %v476_v38  ;;  %v729_v5 = vadd.s32 72, %v1991_v30 }
 0x1c8   :  { %3213 = vst [vmem:[#allocation18_spill] sm:$0xff] %v2355_v50  ;;  %694 = vst.msk [vmem:[#allocation2 + $0x20] sm:$0xff] %vm3216_vm5, %v2355_v50  ;;  %583 = vperm.xlu1 %1690, %v2355_v50  }
 0x1c9   :  { %3214 = vst [vmem:[#allocation19_spill] sm:$0xff] %v2359_v23  ;;  %695 = vst.msk [vmem:[#allocation2 + $0x28] sm:$0xff] %vm3218_vm7, %v2359_v23  ;;  %v490_v29 = vpop.xlane.xlu0 %489  ;;  %vm766_vm5 = vcmp.ne.s32.totalorder %v729_v5, %v1993_v31 }
 0x1ca   :  { %v2373_v10 = vmax.f32 %v2361_v20, %v490_v29  ;;  %v492_v38 = vpop.xlane.xlu1 %491  ;;  %v3223_v29 = vmov 0  ;;  %vm2408_vm3 = vmand %vm766_vm5, %vm773_vm0 }
 0x1cb   :  { %v2378_v16 = vmax.f32 %v2368_v22, %v492_v38  ;;  %v3224_v29 = vsel %vm2393_vm2, 4294967295, %v3223_v29 }
 0x1cc   :  { %3219 = vst [vmem:[#allocation22_spill] sm:$0xff] %v2373_v10  ;;  %702 = vst.msk [vmem:[#allocation2 + $0x60] sm:$0xff] %vm3221_vm4, %v2373_v10  ;;  %623 = vperm.xlu1 %1690, %v2373_v10   ;;  %v379_v10 = vld [vmem:[%s3133_s1 + $0x78] sm:$0xff] }
 0x1cd   :  { %3220 = vst [vmem:[#allocation23_spill] sm:$0xff] %v2378_v16  ;;  %703 = vst.msk [vmem:[#allocation2 + $0x68] sm:$0xff] %vm3222_vm13, %v2378_v16  ;;  %vm768_vm13 = vcmp.ne.s32.totalorder %v731_v2, %v1993_v31 }
 0x1ce   :  { %v404_v38 = vpop.permute.xlu1 %403 }
 0x1cf   :  { %vm440_vm7 = vcmp.eq.s32.totalorder %v404_v38, %v2000_v35  ;;  %v905_v38 = vld [vmem:[#allocation4 + $0x8] sm:$0xff] }
 0x1d0   :  { %421 = vperm.xlu1 %1690, %v377_v53   ;;  %vm927_vm4 = vmand %vm440_vm7, %vm2393_vm2 }
 0x1d1   :  { %v416_v50 = vpop.permute.xlu0 %415  ;;  %v943_v22 = vsel %vm927_vm4, %v2138_v3, 0.0  ;;  %vm2416_vm2 = vmand %vm768_vm13, %vm773_vm0 }
 0x1d2   :  { %v410_v5 = vpop.permute.xlu1 %409  ;;  %966 = vadd.xlane.f32.xlu0 %v943_v22  ;;  %vm444_vm14 = vcmp.eq.s32.totalorder %v416_v50, %v2000_v35  ;;  %v3230_v22 = vsel %vm2038_vm11, %v2048_v46, 0.0 }
 0x1d3   :  { %vm442_vm7 = vcmp.eq.s32.totalorder %v410_v5, %v2000_v35  ;;  %vm931_vm5 = vmand %vm444_vm14, %vm2416_vm2  ;;  %v378_v5 = vld [vmem:[%s3133_s1 + $0x70] sm:$0xff] }
 0x1d4   :  { %427 = vperm.xlu1 %1690, %v379_v10   ;;  %vm929_vm4 = vmand %vm442_vm7, %vm2408_vm3  ;;  %v947_v50 = vsel %vm931_vm5, %v2065_v52, 0.0  ;;  %v3229_v10 = vsel %vm2031_vm10, %v2054_v48, 0.0  ;;  %vm3232_vm10 = vcmask 7168  }
 0x1d5   :  { %v945_v53 = vsel %vm929_vm4, %v2076_v56, 0.0  ;;  %vm3234_vm14 = vmmov %vm3232_vm10 }
 0x1d6   :  { %970 = vadd.xlane.f32.xlu0 %v945_v53  ;;  %vm3238_vm5 = vmmov %vm3232_vm10 }
 0x1da   :  { %974 = vadd.xlane.f32.xlu0 %v947_v50  ;;  %v730_v50 = vadd.s32 80, %v1991_v30 }
 0x1dc   :  { %vm767_vm11 = vcmp.ne.s32.totalorder %v730_v50, %v1993_v31  ;;  %v3237_v50 = vsel %vm2044_vm12, %v2056_v49, 0.0 }
 0x1dd   :  { %vm2459_vm13 = vmand %vm767_vm11, %vm773_vm0 }
 0x1f0   :  { %568 = vperm.xlu0 %1689, %v2302_v27  }
 0x1f4   :  { %578 = vperm.xlu0 %1689, %v2269_v8  }
 0x1f8   :  { %608 = vperm.xlu0 %1689, %v2305_v40   ;;  %952 = vadd.xlane.f32.xlu1 %v3229_v10  ;;  %v907_v10 = vld [vmem:[#allocation4 + $0x18] sm:$0xff] }
 0x1fc   :  { %618 = vperm.xlu0 %1689, %v2288_v17   ;;  %956 = vadd.xlane.f32.xlu1 %v3230_v22  ;;  %v732_v22 = vadd.s32 96, %v1991_v30 }
 0x1fe   :  { %v955_v53 = vpop.xlane.xlu0 %954  ;;  %vm769_vm7 = vcmp.ne.s32.totalorder %v732_v22, %v1993_v31 }
 0x1ff   :  { %v985_v40 = vadd.f32 %v955_v53, %v905_v38  ;;  %v3233_v38 = vsel %vm2096_vm6, %v2125_v62, 0.0  ;;  %vm930_vm6 = vmand %vm443_vm8, %vm2459_vm13 }
 0x200   :  { %424 = vperm.xlu0 %1689, %v378_v5   ;;  %960 = vadd.xlane.f32.xlu1 %v3231_v42  ;;  %v419_v5 = vpop.permute.xlu1 %418 }
 0x201   :  { %1001 = vst.msk [vmem:[#allocation4 + $0x8] sm:$0xff] %vm3232_vm10, %v985_v40  ;;  %vm445_vm4 = vcmp.eq.s32.totalorder %v419_v5, %v2000_v35  ;;  %vm2475_vm10 = vmand %vm769_vm7, %vm773_vm0  ;;  %vm3244_vm7 = vnez %v3169_v37 }
 0x202   :  { %v959_v44 = vpop.xlane.xlu0 %958  ;;  %vm932_vm12 = vmand %vm445_vm4, %vm2475_vm10 }
 0x203   :  { %v987_v34 = vadd.f32 %v959_v44, %v907_v10  ;;  %v948_v45 = vsel %vm932_vm12, %v2132_v1, 0.0  ;;  %vm3246_vm4 = vmmov %vm3238_vm5 }
 0x204   :  { %598 = vperm.xlu0 %1689, %v2324_v13   ;;  %964 = vadd.xlane.f32.xlu1 %v3233_v38 }
 0x205   :  { %1003 = vst.msk [vmem:[#allocation4 + $0x18] sm:$0xff] %vm3234_vm14, %v987_v34  ;;  %v946_v34 = vsel %vm930_vm6, %v2050_v47, 0.0  ;;  %vm3245_vm6 = vmmov %vm3238_vm5 }
 0x206   :  { %v963_v53 = vpop.xlane.xlu0 %962 }
 0x207   :  { %v989_v59 = vadd.f32 %v963_v53, %v909_v61 }
 0x208   :  { %638 = vperm.xlu0 %1689, %v2341_v54   ;;  %968 = vadd.xlane.f32.xlu1 %v3237_v50 }
 0x209   :  { %1005 = vst.msk [vmem:[#allocation4 + $0x28] sm:$0xff] %vm3238_vm5, %v989_v59  ;;  %vm3247_vm5 = vmmov %vm3246_vm4 }
 0x20c   :  { %588 = vperm.xlu0 %1689, %v2359_v23   ;;  %972 = vadd.xlane.f32.xlu1 %v946_v34 }
 0x210   :  { %628 = vperm.xlu0 %1689, %v2378_v16   ;;  %976 = vadd.xlane.f32.xlu1 %v948_v45 }
 0x22f   :  { %v574_v42 = vpop.permute.xlu1 %573 }
 0x230   :  { %v643_v50 = vsub.f32 %v2048_v46, %v574_v42 }
 0x232   :  { %v661_v16 = vmul.f32 1.442695, %v643_v50 }
 0x233   :  { %v614_v10 = vpop.permute.xlu1 %613 }
 0x234   :  { %v651_v44 = vsub.f32 %v2050_v47, %v614_v10 }
 0x236   :  { %v677_v22 = vmul.f32 1.442695, %v651_v44  ;;  %v733_v44 = vadd.s32 104, %v1991_v30 }
 0x237   :  { %v564_v38 = vpop.permute.xlu1 %563 }
 0x238   :  { %1707 = vpow2.f32 %v677_v22  ;;  %v641_v47 = vsub.f32 %v2054_v48, %v564_v38  ;;  %vm770_vm11 = vcmp.ne.s32.totalorder %v733_v44, %v1993_v31 }
 0x239   :  { %vm2497_vm8 = vmand %vm770_vm11, %vm773_vm0  ;;  %vm3248_vm11 = vnez %v3181_v57 }
 0x23a   :  { %v657_v22 = vmul.f32 1.442695, %v641_v47 }
 0x23b   :  { %v604_v61 = vpop.permute.xlu1 %603 }
 0x23c   :  { %v649_v5 = vsub.f32 %v2056_v49, %v604_v61 }
 0x23e   :  { %v673_v53 = vmul.f32 1.442695, %v649_v5 }
 0x23f   :  { %v594_v59 = vpop.permute.xlu1 %593 }
 0x240   :  { %1709 = vpow2.f32 %v673_v53  ;;  %v911_v53 = vld [vmem:[#allocation4 + $0x38] sm:$0xff] }
 0x241   :  { %1711 = vpow2.f32 %v661_v16 }
 0x242   :  { %v1708_v34 = vpop.eup %1707  ;;  %1713 = vpow2.f32 %v657_v22  ;;  %v915_v22 = vld [vmem:[#allocation4 + $0x58] sm:$0xff] }
 0x243   :  { %v634_v23 = vpop.permute.xlu1 %633  ;;  %v834_v45 = vsel %vm2459_vm13, %v1708_v34, 0.0 }
 0x244   :  { %860 = vadd.xlane.f32.xlu1 %v834_v45  ;;  %v913_v45 = vld [vmem:[#allocation4 + $0x48] sm:$0xff] }
 0x247   :  { %v584_v10 = vpop.permute.xlu1 %583 }
 0x24a   :  { %v1710_v49 = vpop.eup %1709 }
 0x24b   :  { %v624_v61 = vpop.permute.xlu1 %623  ;;  %v832_v5 = vsel %vm2025_vm9, %v1710_v49, 0.0  ;;  %v1712_v41 = vpop.eup %1711  ;;  %vm3243_vm9 = vnez %v3171_v39 }
 0x24c   :  { %856 = vadd.xlane.f32.xlu1 %v832_v5  ;;  %v826_v40 = vsel %vm3243_vm9, %v1712_v41, 0.0  ;;  %v1714_v42 = vpop.eup %1713  ;;  %v647_v5 = vsub.f32 %v2125_v62, %v594_v59  ;;  %v655_v41 = vsub.f32 %v2127_v63, %v634_v23  ;;  %v653_v62 = vsub.f32 %v2132_v1, %v624_v61 }
 0x24d   :  { %v824_v38 = vsel %vm3244_vm7, %v1714_v42, 0.0 }
 0x24f   :  { %v422_v48 = vpop.permute.xlu1 %421 }
 0x250   :  { %vm446_vm14 = vcmp.eq.s32.totalorder %v422_v48, %v2000_v35 }
 0x251   :  { %vm933_vm13 = vmand %vm446_vm14, %vm2497_vm8  ;;  %vm3252_vm14 = vnez %v3183_v58 }
 0x252   :  { %v949_v16 = vsel %vm933_vm13, %v2147_v7, 0.0 }
 0x253   :  { %978 = vadd.xlane.f32.xlu0 %v949_v16  ;;  %v669_v16 = vmul.f32 1.442695, %v647_v5  ;;  %v2523_v1 = vpop.permute.xlu1 %427 }
 0x257   :  { %844 = vadd.xlane.f32.xlu0 %v826_v40 }
 0x25b   :  { %840 = vadd.xlane.f32.xlu0 %v824_v38 }
 0x25f   :  { %v967_v50 = vpop.xlane.xlu0 %966 }
 0x260   :  { %v991_v34 = vadd.f32 %v967_v50, %v911_v53  ;;  %v685_v53 = vmul.f32 1.442695, %v655_v41  ;;  %v645_v50 = vsub.f32 %v2130_v0, %v584_v10 }
 0x262   :  { %1007 = vst.msk [vmem:[#allocation4 + $0x38] sm:$0xff] %vm3245_vm6, %v991_v34  ;;  %v665_v59 = vmul.f32 1.442695, %v645_v50 }
 0x263   :  { %v971_v47 = vpop.xlane.xlu0 %970 }
 0x264   :  { %v993_v44 = vadd.f32 %v971_v47, %v913_v45 }
 0x266   :  { %1009 = vst.msk [vmem:[#allocation4 + $0x48] sm:$0xff] %vm3246_vm4, %v993_v44  ;;  %v681_v44 = vmul.f32 1.442695, %v653_v62 }
 0x267   :  { %v975_v49 = vpop.xlane.xlu0 %974 }
 0x268   :  { %v995_v39 = vadd.f32 %v975_v49, %v915_v22  ;;  %v734_v22 = vadd.s32 112, %v1991_v30 }
 0x26a   :  { %1011 = vst.msk [vmem:[#allocation4 + $0x58] sm:$0xff] %vm3247_vm5, %v995_v39  ;;  %vm771_vm12 = vcmp.ne.s32.totalorder %v734_v22, %v1993_v31  ;;  %v908_v22 = vld [vmem:[#allocation4 + $0x20] sm:$0xff] }
 0x26f   :  { %v569_v37 = vpop.permute.xlu0 %568 }
 0x270   :  { %v642_v48 = vsub.f32 %v2074_v55, %v569_v37 }
 0x272   :  { %v659_v40 = vmul.f32 1.442695, %v642_v48  ;;  %v904_v48 = vld [vmem:[#allocation4] sm:$0xff] }
 0x273   :  { %v579_v42 = vpop.permute.xlu0 %578 }
 0x274   :  { %1715 = vpow2.f32 %v659_v40  ;;  %v644_v38 = vsub.f32 %v2063_v51, %v579_v42 }
 0x275   :  { %1717 = vpow2.f32 %v669_v16 }
 0x276   :  { %v663_v34 = vmul.f32 1.442695, %v644_v38 }
 0x277   :  { %v609_v45 = vpop.permute.xlu0 %608 }
 0x278   :  { %1719 = vpow2.f32 %v663_v34  ;;  %v650_v55 = vsub.f32 %v2076_v56, %v609_v45 }
 0x279   :  { %1721 = vpow2.f32 %v685_v53  ;;  %v906_v53 = vld [vmem:[#allocation4 + $0x10] sm:$0xff] }
 0x27a   :  { %1723 = vpow2.f32 %v665_v59  ;;  %v675_v49 = vmul.f32 1.442695, %v650_v55 }
 0x27b   :  { %v619_v47 = vpop.permute.xlu0 %618 }
 0x27c   :  { %v652_v23 = vsub.f32 %v2065_v52, %v619_v47 }
 0x27e   :  { %v1716_v51 = vpop.eup %1715  ;;  %v679_v39 = vmul.f32 1.442695, %v652_v23 }
 0x27f   :  { %v425_v0 = vpop.permute.xlu0 %424  ;;  %v825_v10 = vsel %vm2210_vm15, %v1716_v51, 0.0  ;;  %v1718_v5 = vpop.eup %1717  ;;  %vm2533_vm15 = vmand %vm771_vm12, %vm773_vm0  ;;  %vm3260_vm12 = vnez %v3193_v21 }
 0x280   :  { %1725 = vpow2.f32 %v679_v39  ;;  %842 = vadd.xlane.f32.xlu1 %v825_v10  ;;  %v830_v61 = vsel %vm3248_vm11, %v1718_v5, 0.0  ;;  %vm447_vm9 = vcmp.eq.s32.totalorder %v425_v0, %v2000_v35 }
 0x281   :  { %1727 = vpow2.f32 %v681_v44  ;;  %vm934_vm7 = vmand %vm447_vm9, %vm2533_vm15 }
 0x282   :  { %v1720_v52 = vpop.eup %1719  ;;  %1729 = vpow2.f32 %v675_v49  ;;  %v950_v20 = vsel %vm934_vm7, %v2127_v63, 0.0 }
 0x283   :  { %v599_v56 = vpop.permute.xlu0 %598  ;;  %v827_v37 = vsel %vm2221_vm1, %v1720_v52, 0.0  ;;  %v1722_v15 = vpop.eup %1721  ;;  %vm3251_vm1 = vmmov %vm3246_vm4 }
 0x284   :  { %v648_v16 = vsub.f32 %v2138_v3, %v599_v56  ;;  %852 = vadd.xlane.f32.xlu1 %v830_v61  ;;  %846 = vadd.xlane.f32.xlu0 %v827_v37  ;;  %v838_v18 = vsel %vm2533_vm15, %v1722_v15, 0.0  ;;  %v1724_v50 = vpop.eup %1723  ;;  %vm3253_vm13 = vmmov %vm3251_vm1  ;;  %v910_v56 = vld [vmem:[#allocation4 + $0x30] sm:$0xff]  ;;  %v735_v61 = vadd.s32 120, %v1991_v30  ;;  %v912_v30 = vld [vmem:[#allocation4 + $0x40] sm:$0xff] }
 0x285   :  { %v953_v40 = vpop.xlane.xlu1 %952  ;;  %v828_v23 = vsel %vm3252_vm14, %v1724_v50, 0.0  ;;  %vm3256_vm6 = vmmov %vm3251_vm1 }
 0x286   :  { %v671_v42 = vmul.f32 1.442695, %v648_v16  ;;  %v984_v38 = vadd.f32 %v953_v40, %v904_v48  ;;  %vm3259_vm5 = vmmov %vm3251_vm1 }
 0x287   :  { %v639_v57 = vpop.permute.xlu0 %638  ;;  %vm3261_vm11 = vmmov %vm3251_vm1 }
 0x288   :  { %1731 = vpow2.f32 %v671_v42  ;;  %1000 = vst.msk [vmem:[#allocation4] sm:$0xff] %vm3251_vm1, %v984_v38  ;;  %v656_v3 = vsub.f32 %v2140_v4, %v639_v57  ;;  %868 = vadd.xlane.f32.xlu1 %v838_v18  ;;  %vm3262_vm15 = vmmov %vm3251_vm1 }
 0x289   :  { %v957_v34 = vpop.xlane.xlu1 %956 }
 0x28a   :  { %v1726_v45 = vpop.eup %1725  ;;  %v687_v62 = vmul.f32 1.442695, %v656_v3  ;;  %v986_v59 = vadd.f32 %v957_v34, %v906_v53  ;;  %v916_v53 = vld [vmem:[#allocation4 + $0x60] sm:$0xff] }
 0x28b   :  { %v1728_v55 = vpop.eup %1727  ;;  %v589_v47 = vpop.permute.xlu0 %588  ;;  %v835_v44 = vsel %vm2416_vm2, %v1726_v45, 0.0  ;;  %vm3254_vm2 = vmmov %vm3251_vm1  ;;  %v3263_v45 = vsub.f32 %v2252_v33, %v2266_v43  ;;  %v800_v33 = vld [vmem:[#allocation3 + $0x40] sm:$0xff]  ;;  %v3267_v43 = vsub.f32 %v2244_v26, %v2250_v32 }
 0x28c   :  { %v1730_v51 = vpop.eup %1729  ;;  %1733 = vpow2.f32 %v687_v62  ;;  %1002 = vst.msk [vmem:[#allocation4 + $0x10] sm:$0xff] %vm3253_vm13, %v986_v59  ;;  %v646_v49 = vsub.f32 %v2145_v6, %v589_v47  ;;  %848 = vadd.xlane.f32.xlu1 %v828_v23  ;;  %862 = vadd.xlane.f32.xlu0 %v835_v44  ;;  %v836_v58 = vsel %vm2475_vm10, %v1728_v55, 0.0  ;;  %vm772_vm10 = vcmp.ne.s32.totalorder %v735_v61, %v1993_v31  ;;  %v802_v59 = vld [vmem:[#allocation3 + $0x50] sm:$0xff]  ;;  %vm3268_vm14 = vmmov %vm3254_vm2 }
 0x28d   :  { %v961_v39 = vpop.xlane.xlu1 %960  ;;  %v833_v2 = vsel %vm2408_vm3, %v1730_v51, 0.0  ;;  %vm3255_vm3 = vnez %v3224_v29  ;;  %vm2564_vm4 = vmand %vm772_vm10, %vm773_vm0  ;;  %v914_v29 = vld [vmem:[#allocation4 + $0x50] sm:$0xff]  ;;  %vm448_vm0 = vcmp.eq.s32.totalorder %v2523_v1, %v2000_v35  ;;  %v549_v62 = vmul.f32 1.442695, %v3263_v45 }
 0x28e   :  { %v667_v10 = vmul.f32 1.442695, %v646_v49  ;;  %v988_v5 = vadd.f32 %v961_v39, %v908_v22  ;;  %vm935_vm1 = vmand %vm448_vm0, %vm2564_vm4  ;;  %v3264_v35 = vsub.f32 %v2271_v9, %v2285_v14  ;;  %v3265_v23 = vsub.f32 %v2242_v25, %v2247_v28  ;;  %v917_v39 = vld [vmem:[#allocation4 + $0x68] sm:$0xff]  ;;  %v794_v28 = vld [vmem:[#allocation3 + $0x10] sm:$0xff] }
 0x28f   :  { %v629_v52 = vpop.permute.xlu0 %628  ;;  %v951_v21 = vsel %vm935_vm1, %v2140_v4, 0.0  ;;  %v529_v9 = vmul.f32 1.442695, %v3267_v43  ;;  %vm3269_vm13 = vmmov %vm3254_vm2 }
 0x290   :  { %1735 = vpow2.f32 %v667_v10  ;;  %1004 = vst.msk [vmem:[#allocation4 + $0x20] sm:$0xff] %vm3254_vm2, %v988_v5  ;;  %v654_v6 = vsub.f32 %v2147_v7, %v629_v52  ;;  %864 = vadd.xlane.f32.xlu1 %v836_v58  ;;  %858 = vadd.xlane.f32.xlu0 %v833_v2  ;;  %v545_v1 = vmul.f32 1.442695, %v3264_v35  ;;  %v533_v44 = vmul.f32 1.442695, %v3265_v23  ;;  %vm3270_vm9 = vmmov %vm3254_vm2  ;;  %v798_v35 = vld [vmem:[#allocation3 + $0x30] sm:$0xff] }
 0x291   :  { %v965_v0 = vpop.xlane.xlu1 %964  ;;  %vm3288_vm7 = vmmov %vm3254_vm2 }
 0x292   :  { %v1732_v37 = vpop.eup %1731  ;;  %v683_v24 = vmul.f32 1.442695, %v654_v6  ;;  %v990_v48 = vadd.f32 %v965_v0, %v910_v56  ;;  %v792_v56 = vld [vmem:[#allocation3] sm:$0xff]  ;;  %v3271_v0 = vsub.f32 %v2290_v19, %v2302_v27  ;;  %v3277_v27 = vld [vmem:[#allocation16_spill] sm:$0xff]  ;;  %vm3292_vm10 = vmmov %vm3254_vm2 }
 0x293   :  { %v831_v15 = vsel %vm3255_vm3, %v1732_v37, 0.0  ;;  %vm3291_vm3 = vmmov %vm3254_vm2 }
 0x294   :  { %1737 = vpow2.f32 %v683_v24  ;;  %1006 = vst.msk [vmem:[#allocation4 + $0x30] sm:$0xff] %vm3256_vm6, %v990_v48  ;;  %980 = vadd.xlane.f32.xlu1 %v950_v20  ;;  %854 = vadd.xlane.f32.xlu0 %v831_v15  ;;  %v531_v37 = vmul.f32 1.442695, %v3271_v0  ;;  %v3272_v24 = vsub.f32 %v2259_v36, %v2269_v8  ;;  %v3273_v20 = vsub.f32 %v2307_v60, %v2321_v12  ;;  %v3280_v12 = vld [vmem:[#allocation10_spill] sm:$0xff]  ;;  %v3281_v60 = vld [vmem:[#allocation11_spill] sm:$0xff]  ;;  %vm3295_vm6 = vmmov %vm3254_vm2 }
 0x295   :  { %v969_v7 = vpop.xlane.xlu1 %968  ;;  %1739 = vpow2.f32 %v549_v62  ;;  %v795_v62 = vld [vmem:[#allocation3 + $0x18] sm:$0xff]  ;;  %vm3300_vm0 = vmmov %vm3254_vm2 }
 0x296   :  { %v1734_v16 = vpop.eup %1733  ;;  %v992_v41 = vadd.f32 %v969_v7, %v912_v30  ;;  %1741 = vpow2.f32 %v545_v1  ;;  %v535_v48 = vmul.f32 1.442695, %v3272_v24  ;;  %v541_v15 = vmul.f32 1.442695, %v3273_v20  ;;  %v3274_v7 = vld [vmem:[#allocation13_spill] sm:$0xff]  ;;  %vm3302_vm1 = vmmov %vm3300_vm0 }
 0x297   :  { %v839_v63 = vsel %vm2564_vm4, %v1734_v16, 0.0  ;;  %1743 = vpow2.f32 %v533_v44  ;;  %v524_v30 = vsub.f32 %v2278_v11, %v2288_v17  ;;  %v3275_v16 = vld [vmem:[#allocation15_spill] sm:$0xff]  ;;  %v3283_v11 = vld [vmem:[#allocation12_spill] sm:$0xff]  ;;  %v804_v20 = vld [vmem:[#allocation3 + $0x60] sm:$0xff] }
 0x298   :  { %1008 = vst.msk [vmem:[#allocation4 + $0x40] sm:$0xff] %vm3259_vm5, %v992_v41  ;;  %870 = vadd.xlane.f32.xlu0 %v839_v63  ;;  %1745 = vpow2.f32 %v529_v9  ;;  %v3276_v41 = vsub.f32 %v3274_v7, %v3275_v16  ;;  %v3278_v63 = vld [vmem:[#allocation18_spill] sm:$0xff]  ;;  %v520_v17 = vsub.f32 %v3283_v11, %v2324_v13  ;;  %vm3296_vm4 = vmmov %vm3254_vm2 }
 0x299   :  { %v973_v42 = vpop.xlane.xlu1 %972  ;;  %1747 = vpow2.f32 %v531_v37  ;;  %v551_v19 = vmul.f32 1.442695, %v524_v30  ;;  %v3279_v36 = vsub.f32 %v3277_v27, %v3278_v63  ;;  %vm3297_vm5 = vmmov %vm3254_vm2  ;;  %v799_v63 = vld [vmem:[#allocation3 + $0x38] sm:$0xff] }
 0x29a   :  { %v1736_v38 = vpop.eup %1735  ;;  %v994_v57 = vadd.f32 %v973_v42, %v914_v29  ;;  %1749 = vpow2.f32 %v535_v48  ;;  %v557_v40 = vmul.f32 1.442695, %v3276_v41  ;;  %v793_v42 = vld [vmem:[#allocation3 + $0x8] sm:$0xff] }
 0x29b   :  { %v829_v18 = vsel %vm3260_vm12, %v1736_v38, 0.0  ;;  %1751 = vpow2.f32 %v541_v15  ;;  %v537_v8 = vmul.f32 1.442695, %v3279_v36  ;;  %v3282_v38 = vsub.f32 %v3280_v12, %v3281_v60  ;;  %v801_v48 = vld [vmem:[#allocation3 + $0x48] sm:$0xff]  ;;  %vm3298_vm12 = vmmov %vm3254_vm2 }
 0x29c   :  { %1010 = vst.msk [vmem:[#allocation4 + $0x50] sm:$0xff] %vm3261_vm11, %v994_v57  ;;  %850 = vadd.xlane.f32.xlu0 %v829_v18  ;;  %1753 = vpow2.f32 %v557_v40  ;;  %v3284_v18 = vld [vmem:[#allocation20_spill] sm:$0xff]  ;;  %vm3299_vm11 = vmmov %vm3254_vm2 }
 0x29d   :  { %v977_v31 = vpop.xlane.xlu1 %976  ;;  %1755 = vpow2.f32 %v551_v19  ;;  %v547_v57 = vmul.f32 1.442695, %v3282_v38 }
 0x29e   :  { %v1738_v50 = vpop.eup %1737  ;;  %v996_v3 = vadd.f32 %v977_v31, %v916_v53  ;;  %1757 = vpow2.f32 %v537_v8  ;;  %v3285_v53 = vld [vmem:[#allocation22_spill] sm:$0xff] }
 0x29f   :  { %v837_v34 = vsel %vm2497_vm8, %v1738_v50, 0.0  ;;  %v1740_v46 = vpop.eup %1739  ;;  %vm3266_vm8 = vmmov %vm3254_vm2  ;;  %v3286_v31 = vsub.f32 %v3284_v18, %v3285_v53  ;;  %1759 = vpow2.f32 %v547_v57  ;;  %v807_v57 = vld [vmem:[#allocation3 + $0x78] sm:$0xff] }
 0x2a0   :  { %1012 = vst.msk [vmem:[#allocation4 + $0x60] sm:$0xff] %vm3262_vm15, %v996_v3  ;;  %866 = vadd.xlane.f32.xlu0 %v837_v34  ;;  %v818_v55 = vmul.f32 %v1740_v46, %v802_v59  ;;  %v1742_v22 = vpop.eup %1741  ;;  %v543_v46 = vmul.f32 1.442695, %v520_v17  ;;  %v3287_v59 = vld [vmem:[#allocation14_spill] sm:$0xff]  ;;  %vm3301_vm15 = vmmov %vm3300_vm0 }
 0x2a1   :  { %v816_v14 = vmul.f32 %v1742_v22, %v800_v33  ;;  %v1744_v10 = vpop.eup %1743  ;;  %v553_v50 = vmul.f32 1.442695, %v3286_v31  ;;  %v806_v22 = vld [vmem:[#allocation3 + $0x70] sm:$0xff] }
 0x2a2   :  { %v810_v52 = vmul.f32 %v1744_v10, %v794_v28  ;;  %v1746_v58 = vpop.eup %1745  ;;  %v803_v28 = vld [vmem:[#allocation3 + $0x58] sm:$0xff] }
 0x2a3   :  { %v808_v26 = vmul.f32 %v1746_v58, %v792_v56  ;;  %v1748_v29 = vpop.eup %1747  ;;  %1761 = vpow2.f32 %v553_v50  ;;  %v3294_v56 = vld [vmem:[#allocation21_spill] sm:$0xff]  ;;  %v797_v50 = vld [vmem:[#allocation3 + $0x28] sm:$0xff] }
 0x2a4   :  { %982 = vadd.xlane.f32.xlu0 %v951_v21  ;;  %v1750_v3 = vpop.eup %1749  ;;  %v809_v34 = vmul.f32 %v1748_v29, %v793_v42  ;;  %1763 = vpow2.f32 %v543_v46  ;;  %v918_v29 = vld [vmem:[#allocation4 + $0x70] sm:$0xff] }
 0x2a5   :  { %v1752_v21 = vpop.eup %1751  ;;  %v811_v13 = vmul.f32 %v1750_v3, %v795_v62  ;;  %v805_v62 = vld [vmem:[#allocation3 + $0x68] sm:$0xff] }
 0x2a6   :  { %v1754_v23 = vpop.eup %1753 }
 0x2d1   :  { %v861_v47 = vpop.xlane.xlu1 %860 }
 0x2d2   :  { %v882_v4 = vadd.f32 %v861_v47, %v818_v55  ;;  %v528_v55 = vsub.f32 %v3287_v59, %v2341_v54  ;;  %v814_v47 = vmul.f32 %v1752_v21, %v798_v35  ;;  %v822_v54 = vmul.f32 %v1754_v23, %v806_v22 }
 0x2d4   :  { %898 = vst.msk [vmem:[#allocation3 + $0x50] sm:$0xff] %vm3266_vm8, %v882_v4  ;;  %v559_v9 = vmul.f32 1.442695, %v528_v55  ;;  %vm3303_vm8 = vmmov %vm3300_vm0  ;;  %v919_v55 = vld [vmem:[#allocation4 + $0x78] sm:$0xff] }
 0x2d6   :  { %1765 = vpow2.f32 %v559_v9 }
 0x2d9   :  { %v857_v51 = vpop.xlane.xlu1 %856 }
 0x2da   :  { %v880_v49 = vadd.f32 %v857_v51, %v816_v14  ;;  %v3289_v14 = vld [vmem:[#allocation19_spill] sm:$0xff]  ;;  %v3290_v51 = vld [vmem:[#allocation17_spill] sm:$0xff] }
 0x2dc   :  { %896 = vst.msk [vmem:[#allocation3 + $0x40] sm:$0xff] %vm3268_vm14, %v880_v49  ;;  %v518_v49 = vsub.f32 %v3290_v51, %v3289_v14  ;;  %vm3304_vm14 = vmmov %vm3300_vm0 }
 0x2de   :  { %v539_v58 = vmul.f32 1.442695, %v518_v49 }
 0x2e0   :  { %v979_v25 = vpop.xlane.xlu0 %978  ;;  %1767 = vpow2.f32 %v539_v58 }
 0x2e1   :  { %v997_v5 = vadd.f32 %v979_v25, %v917_v39  ;;  %v1756_v39 = vpop.eup %1755 }
 0x2e2   :  { %v1758_v10 = vpop.eup %1757 }
 0x2e3   :  { %1013 = vst.msk [vmem:[#allocation4 + $0x68] sm:$0xff] %vm3269_vm13, %v997_v5  ;;  %v796_v5 = vld [vmem:[#allocation3 + $0x20] sm:$0xff]  ;;  %vm3305_vm13 = vmmov %vm3300_vm0 }
 0x2e4   :  { %v845_v2 = vpop.xlane.xlu0 %844 }
 0x2e5   :  { %v874_v61 = vadd.f32 %v845_v2, %v810_v52  ;;  %v3293_v2 = vld [vmem:[#allocation23_spill] sm:$0xff] }
 0x2e7   :  { %890 = vst.msk [vmem:[#allocation3 + $0x10] sm:$0xff] %vm3270_vm9, %v874_v61  ;;  %v526_v61 = vsub.f32 %v3294_v56, %v3293_v2 }
 0x2e8   :  { %v841_v32 = vpop.xlane.xlu0 %840 }
 0x2e9   :  { %v872_v6 = vadd.f32 %v841_v32, %v808_v26  ;;  %v1760_v26 = vpop.eup %1759  ;;  %v819_v32 = vmul.f32 %v1756_v39, %v803_v28  ;;  %v555_v7 = vmul.f32 1.442695, %v526_v61 }
 0x2ea   :  { %v1762_v0 = vpop.eup %1761  ;;  %v817_v16 = vmul.f32 %v1760_v26, %v801_v48 }
 0x2eb   :  { %888 = vst.msk [vmem:[#allocation3] sm:$0xff] %vm3254_vm2, %v872_v6  ;;  %v812_v6 = vmul.f32 %v1758_v10, %v796_v5  ;;  %v820_v41 = vmul.f32 %v1762_v0, %v804_v20  ;;  %v1764_v40 = vpop.eup %1763  ;;  %1769 = vpow2.f32 %v555_v7 }
 0x2ec   :  { %v815_v42 = vmul.f32 %v1764_v40, %v799_v63  ;;  %v1766_v12 = vpop.eup %1765 }
 0x2ed   :  { %v823_v18 = vmul.f32 %v1766_v12, %v807_v57  ;;  %v1768_v53 = vpop.eup %1767 }
 0x2f5   :  { %v1770_v21 = vpop.eup %1769 }
 0x30d   :  { %v843_v45 = vpop.xlane.xlu1 %842 }
 0x30e   :  { %v873_v1 = vadd.f32 %v843_v45, %v809_v34  ;;  %v813_v34 = vmul.f32 %v1768_v53, %v797_v50 }
 0x310   :  { %889 = vst.msk [vmem:[#allocation3 + $0x8] sm:$0xff] %vm3288_vm7, %v873_v1  ;;  %v821_v1 = vmul.f32 %v1770_v21, %v805_v62 }
 0x311   :  { %v847_v44 = vpop.xlane.xlu0 %846  ;;  %v853_v4 = vpop.xlane.xlu1 %852 }
 0x312   :  { %v875_v33 = vadd.f32 %v847_v44, %v811_v13  ;;  %v878_v43 = vadd.f32 %v853_v4, %v814_v47 }
 0x314   :  { %891 = vst.msk [vmem:[#allocation3 + $0x18] sm:$0xff] %vm3291_vm3, %v875_v33 }
 0x315   :  { %894 = vst.msk [vmem:[#allocation3 + $0x30] sm:$0xff] %vm3292_vm10, %v878_v43  ;;  %v869_v25 = vpop.xlane.xlu1 %868 }
 0x316   :  { %v886_v52 = vadd.f32 %v869_v25, %v822_v54 }
 0x318   :  { %902 = vst.msk [vmem:[#allocation3 + $0x70] sm:$0xff] %vm3295_vm6, %v886_v52 }
 0x319   :  { %v863_v37 = vpop.xlane.xlu0 %862  ;;  %v849_v24 = vpop.xlane.xlu1 %848 }
 0x31a   :  { %v883_v15 = vadd.f32 %v863_v37, %v819_v32  ;;  %v876_v30 = vadd.f32 %v849_v24, %v812_v6 }
 0x31c   :  { %899 = vst.msk [vmem:[#allocation3 + $0x58] sm:$0xff] %vm3296_vm4, %v883_v15 }
 0x31d   :  { %892 = vst.msk [vmem:[#allocation3 + $0x20] sm:$0xff] %vm3297_vm5, %v876_v30  ;;  %v859_v19 = vpop.xlane.xlu0 %858  ;;  %v865_v27 = vpop.xlane.xlu1 %864 }
 0x31e   :  { %v881_v36 = vadd.f32 %v859_v19, %v817_v16  ;;  %v884_v8 = vadd.f32 %v865_v27, %v820_v41 }
 0x320   :  { %897 = vst.msk [vmem:[#allocation3 + $0x48] sm:$0xff] %vm3298_vm12, %v881_v36 }
 0x321   :  { %900 = vst.msk [vmem:[#allocation3 + $0x60] sm:$0xff] %vm3299_vm11, %v884_v8  ;;  %v855_v60 = vpop.xlane.xlu0 %854  ;;  %v981_v38 = vpop.xlane.xlu1 %980 }
 0x322   :  { %v879_v11 = vadd.f32 %v855_v60, %v815_v42  ;;  %v998_v17 = vadd.f32 %v981_v38, %v918_v29 }
 0x324   :  { %895 = vst.msk [vmem:[#allocation3 + $0x38] sm:$0xff] %vm3300_vm0, %v879_v11 }
 0x325   :  { %1014 = vst.msk [vmem:[#allocation4 + $0x70] sm:$0xff] %vm3301_vm15, %v998_v17  ;;  %v871_v31 = vpop.xlane.xlu0 %870 }
 0x326   :  { %v887_v3 = vadd.f32 %v871_v31, %v823_v18 }
 0x328   :  { %903 = vst.msk [vmem:[#allocation3 + $0x78] sm:$0xff] %vm3302_vm1, %v887_v3 }
 0x329   :  { %v851_v45 = vpop.xlane.xlu0 %850 }
 0x32a   :  { %v877_v35 = vadd.f32 %v851_v45, %v813_v34 }
 0x32c   :  { %893 = vst.msk [vmem:[#allocation3 + $0x28] sm:$0xff] %vm3303_vm8, %v877_v35 }
 0x32d   :  { %v867_v46 = vpop.xlane.xlu0 %866 }
 0x32e   :  { %v885_v59 = vadd.f32 %v867_v46, %v821_v1 }
 0x330   :  { %901 = vst.msk [vmem:[#allocation3 + $0x68] sm:$0xff] %vm3304_vm14, %v885_v59 }
 0x331   :  { %v983_v13 = vpop.xlane.xlu0 %982 }
 0x332   :  { %v999_v47 = vadd.f32 %v983_v13, %v919_v55 }
 0x334   :  { %1015 = vst.msk [vmem:[#allocation4 + $0x78] sm:$0xff] %vm3305_vm13, %v999_v47 }
 0x335 PF:  { %1217 = sbr.rel (%p1595_p0) target bundleno = 1118 (0x45e), region = 49 }
 0x33c   :  { %v1218_v23 = vld [vmem:[#allocation3] sm:$0xff]  ;;  %v1219_v44 = vld [vmem:[#allocation3 + $0x8] sm:$0xff]  ;;  %v1220_v4 = vld [vmem:[#allocation3 + $0x10] sm:$0xff]  ;;  %vm1458_vm8 = vcmask 7168  }
 0x33d   :  { %v1221_v22 = vld [vmem:[#allocation3 + $0x18] sm:$0xff]  ;;  %1771 = vlog2.f32 %v1218_v23  ;;  %v1222_v33 = vld [vmem:[#allocation3 + $0x20] sm:$0xff]  ;;  %v1223_v43 = vld [vmem:[#allocation3 + $0x28] sm:$0xff] }
 0x33e   :  { %1773 = vlog2.f32 %v1219_v44  ;;  %v1224_v9 = vld [vmem:[#allocation3 + $0x30] sm:$0xff]  ;;  %v1225_v14 = vld [vmem:[#allocation3 + $0x38] sm:$0xff]  ;;  %v1226_v51 = vld [vmem:[#allocation3 + $0x40] sm:$0xff] }
 0x33f   :  { %1775 = vlog2.f32 %v1220_v4  ;;  %v1227_v49 = vld [vmem:[#allocation3 + $0x48] sm:$0xff]  ;;  %v1228_v39 = vld [vmem:[#allocation3 + $0x50] sm:$0xff]  ;;  %v1229_v54 = vld [vmem:[#allocation3 + $0x58] sm:$0xff] }
 0x340   :  { %1777 = vlog2.f32 %v1221_v22  ;;  %v1230_v10 = vld [vmem:[#allocation3 + $0x60] sm:$0xff]  ;;  %v1231_v28 = vld [vmem:[#allocation3 + $0x68] sm:$0xff]  ;;  %v1232_v52 = vld [vmem:[#allocation3 + $0x70] sm:$0xff] }
 0x341   :  { %1779 = vlog2.f32 %v1222_v33  ;;  %v1233_v56 = vld [vmem:[#allocation3 + $0x78] sm:$0xff]  ;;  %v1266_v37 = vld [vmem:[#allocation2] sm:$0xff]  ;;  %v1267_v20 = vld [vmem:[#allocation2 + $0x8] sm:$0xff] }
 0x342   :  { %1781 = vlog2.f32 %v1223_v43  ;;  %v1268_v30 = vld [vmem:[#allocation2 + $0x10] sm:$0xff]  ;;  %v1269_v27 = vld [vmem:[#allocation2 + $0x18] sm:$0xff]  ;;  %v2651_v36 = vld [vmem:[%s3135_s3] sm:$0xff] }
 0x343   :  { %1783 = vlog2.f32 %v1224_v9  ;;  %v1270_v29 = vld [vmem:[#allocation2 + $0x20] sm:$0xff]  ;;  %v1271_v42 = vld [vmem:[#allocation2 + $0x28] sm:$0xff]  ;;  %v1272_v11 = vld [vmem:[#allocation2 + $0x30] sm:$0xff]  ;;  %vm1330_vm9 = vcmp.gt.f32.partialorder %v2651_v36, 0.0 }
 0x344   :  { %1785 = vlog2.f32 %v1225_v14  ;;  %v2656_v60 = vld [vmem:[%s3135_s3 + $0x8] sm:$0xff]  ;;  %v2661_v17 = vld [vmem:[%s3136_s4] sm:$0xff]  ;;  %v2666_v18 = vld [vmem:[%s3135_s3 + $0x10] sm:$0xff] }
 0x345   :  { %1787 = vlog2.f32 %v1226_v51  ;;  %v1273_v50 = vld [vmem:[#allocation2 + $0x38] sm:$0xff]  ;;  %v2671_v34 = vld [vmem:[%s3136_s4 + $0x8] sm:$0xff]  ;;  %v2676_v21 = vld [vmem:[%s3136_s4 + $0x10] sm:$0xff]  ;;  %vm1331_vm2 = vcmp.gt.f32.partialorder %v2656_v60, 0.0  ;;  %vm1332_vm7 = vcmp.gt.f32.partialorder %v2666_v18, 0.0 }
 0x346   :  { %1789 = vlog2.f32 %v1227_v49  ;;  %v1274_v1 = vld [vmem:[#allocation2 + $0x40] sm:$0xff]  ;;  %v1275_v46 = vld [vmem:[#allocation2 + $0x48] sm:$0xff]  ;;  %v1276_v59 = vld [vmem:[#allocation2 + $0x50] sm:$0xff] }
 0x347   :  { %v1772_v25 = vpop.eup %1771  ;;  %1791 = vlog2.f32 %v1228_v39  ;;  %v2685_v13 = vld [vmem:[%s3136_s4 + $0x18] sm:$0xff]  ;;  %v2695_v23 = vld [vmem:[%s3135_s3 + $0x20] sm:$0xff]  ;;  %v2700_v44 = vld [vmem:[%s3135_s3 + $0x28] sm:$0xff] }
 0x348   :  { %v1774_v5 = vpop.eup %1773  ;;  %1793 = vlog2.f32 %v1229_v54  ;;  %v1235_v32 = vmul.f32 0.6931472, %v1772_v25  ;;  %v2690_v47 = vld [vmem:[%s3135_s3 + $0x18] sm:$0xff]  ;;  %v1278_v14 = vld [vmem:[#allocation2 + $0x60] sm:$0xff]  ;;  %v1279_v51 = vld [vmem:[#allocation2 + $0x68] sm:$0xff]  ;;  %vm1334_vm10 = vcmp.gt.f32.partialorder %v2695_v23, 0.0 }
 0x349   :  { %v1776_v58 = vpop.eup %1775  ;;  %1795 = vlog2.f32 %v1230_v10  ;;  %v1237_v0 = vmul.f32 0.6931472, %v1774_v5  ;;  %v1277_v9 = vld [vmem:[#allocation2 + $0x58] sm:$0xff]  ;;  %vm1333_vm3 = vcmp.gt.f32.partialorder %v2690_v47, 0.0  ;;  %vm1335_vm6 = vcmp.gt.f32.partialorder %v2700_v44, 0.0 }
 0x34a   :  { %v1778_v2 = vpop.eup %1777  ;;  %1797 = vlog2.f32 %v1231_v28  ;;  %v1239_v48 = vmul.f32 0.6931472, %v1776_v58  ;;  %v1282_v41 = vadd.f32 %v1266_v37, %v1235_v32  ;;  %v2737_v37 = vld [vmem:[%s3135_s3 + $0x48] sm:$0xff] }
 0x34b   :  { %v1780_v61 = vpop.eup %1779  ;;  %1799 = vlog2.f32 %v1232_v52  ;;  %v1241_v16 = vmul.f32 0.6931472, %v1778_v2  ;;  %v1283_v63 = vadd.f32 %v1267_v20, %v1237_v0  ;;  %v1280_v52 = vld [vmem:[#allocation2 + $0x70] sm:$0xff]  ;;  %v2713_v2 = vld [vmem:[%s3136_s4 + $0x20] sm:$0xff]  ;;  %vm1339_vm11 = vcmp.gt.f32.partialorder %v2737_v37, 0.0 }
 0x34c   :  { %v1782_v26 = vpop.eup %1781  ;;  %1801 = vlog2.f32 %v1233_v56  ;;  %v1243_v19 = vmul.f32 0.6931472, %v1780_v61  ;;  %v1284_v12 = vadd.f32 %v1268_v30, %v1239_v48  ;;  %v2680_v45 = vmul.f32 %v2661_v17, %v1282_v41  ;;  %v2718_v56 = vld [vmem:[%s3135_s3 + $0x30] sm:$0xff]  ;;  %v2732_v0 = vld [vmem:[%s3135_s3 + $0x40] sm:$0xff]  ;;  %v2757_v41 = vld [vmem:[%s3136_s4 + $0x38] sm:$0xff] }
 0x34d   :  { %v1784_v6 = vpop.eup %1783  ;;  %v1245_v57 = vmul.f32 0.6931472, %v1782_v26  ;;  %v1285_v3 = vadd.f32 %v1269_v27, %v1241_v16  ;;  %v2704_v4 = vmul.f32 %v2671_v34, %v1283_v63  ;;  %v1281_v26 = vld [vmem:[#allocation2 + $0x78] sm:$0xff]  ;;  %v2752_v16 = vld [vmem:[%s3136_s4 + $0x30] sm:$0xff]  ;;  %vm1336_vm4 = vcmp.gt.f32.partialorder %v2718_v56, 0.0 }
 0x34e   :  { %v1786_v24 = vpop.eup %1785  ;;  %v1247_v31 = vmul.f32 0.6931472, %v1784_v6  ;;  %v1286_v55 = vadd.f32 %v1270_v29, %v1243_v19  ;;  %v2708_v49 = vmul.f32 %v2676_v21, %v1284_v12  ;;  %v2727_v6 = vld [vmem:[%s3135_s3 + $0x38] sm:$0xff]  ;;  %v2772_v29 = vld [vmem:[%s3136_s4 + $0x48] sm:$0xff]  ;;  %vm1338_vm12 = vcmp.gt.f32.partialorder %v2732_v0, 0.0 }
 0x34f   :  { %v1788_v15 = vpop.eup %1787  ;;  %v1249_v35 = vmul.f32 0.6931472, %v1786_v24  ;;  %v1287_v28 = vadd.f32 %v1271_v42, %v1245_v57  ;;  %v2722_v61 = vmul.f32 %v2685_v13, %v1285_v3  ;;  %v2777_v42 = vld [vmem:[%s3136_s4 + $0x50] sm:$0xff]  ;;  %v2782_v12 = vld [vmem:[%s3135_s3 + $0x58] sm:$0xff]  ;;  %vm1337_vm5 = vcmp.gt.f32.partialorder %v2727_v6, 0.0 }
 0x350   :  { %v1790_v7 = vpop.eup %1789  ;;  %v1251_v22 = vmul.f32 0.6931472, %v1788_v15  ;;  %v1288_v58 = vadd.f32 %v1272_v11, %v1247_v31  ;;  %v2742_v24 = vmul.f32 %v2713_v2, %v1286_v55  ;;  %v2788_v57 = vld [vmem:[%s3136_s4 + $0x58] sm:$0xff]  ;;  %v2793_v11 = vld [vmem:[%s3136_s4 + $0x60] sm:$0xff]  ;;  %v2813_v3 = vld [vmem:[%s3135_s3 + $0x70] sm:$0xff]  ;;  %vm1341_vm15 = vcmp.gt.f32.partialorder %v2782_v12, 0.0 }
 0x351   :  { %v1792_v40 = vpop.eup %1791  ;;  %v1253_v33 = vmul.f32 0.6931472, %v1790_v7  ;;  %v1289_v32 = vadd.f32 %v1273_v50, %v1249_v35  ;;  %v2747_v7 = vld [vmem:[%s3136_s4 + $0x28] sm:$0xff]  ;;  %v2803_v31 = vld [vmem:[%s3135_s3 + $0x60] sm:$0xff]  ;;  %3307 = vst [vmem:[#allocation25_spill] sm:$0xff] %v2813_v3  ;;  %vm1344_vm13 = vcmp.gt.f32.partialorder %v2813_v3, 0.0 }
 0x352   :  { %v1794_v8 = vpop.eup %1793  ;;  %v1255_v43 = vmul.f32 0.6931472, %v1792_v40  ;;  %v1290_v20 = vadd.f32 %v1274_v1, %v1251_v22  ;;  %v2762_v40 = vld [vmem:[%s3135_s3 + $0x50] sm:$0xff]  ;;  %v2808_v50 = vld [vmem:[%s3135_s3 + $0x68] sm:$0xff]  ;;  %v2824_v35 = vld [vmem:[#allocation4] sm:$0xff] }
 0x353   :  { %v1796_v38 = vpop.eup %1795  ;;  %v1257_v54 = vmul.f32 0.6931472, %v1794_v8  ;;  %v1291_v15 = vadd.f32 %v1275_v46, %v1253_v33  ;;  %v2767_v8 = vld [vmem:[%s3136_s4 + $0x40] sm:$0xff]  ;;  %3306 = vst [vmem:[#allocation24_spill] sm:$0xff] %v2808_v50  ;;  %vm3161_vm0 = vcmp.gt.f32.partialorder %v2762_v40, 0.0  ;;  %v2826_v1 = vld [vmem:[#allocation4 + $0x8] sm:$0xff]  ;;  %v2829_v46 = vmul.f32 %v2747_v7, %v1287_v28 }
 0x354   :  { %v1798_v53 = vpop.eup %1797  ;;  %v1259_v10 = vmul.f32 0.6931472, %v1796_v38  ;;  %v1292_v30 = vadd.f32 %v1276_v59, %v1255_v43  ;;  %v2832_v59 = vmul.f32 %v2752_v16, %v1288_v58  ;;  %v2835_v55 = vmul.f32 %v2757_v41, %v1289_v32  ;;  %v2839_v33 = vld [vmem:[#allocation4 + $0x10] sm:$0xff]  ;;  %v2841_v43 = vld [vmem:[#allocation4 + $0x18] sm:$0xff]  ;;  %v2879_v32 = vld [vmem:[#allocation4 + $0x40] sm:$0xff] }
 0x355   :  { %v1800_v62 = vpop.eup %1799  ;;  %v1261_v25 = vmul.f32 0.6931472, %v1798_v53  ;;  %v1293_v19 = vadd.f32 %v1277_v9, %v1257_v54  ;;  %v2798_v53 = vld [vmem:[%s3136_s4 + $0x68] sm:$0xff]  ;;  %v2843_v9 = vld [vmem:[#allocation4 + $0x20] sm:$0xff]  ;;  %v2857_v54 = vld [vmem:[%s3136_s4 + $0x70] sm:$0xff]  ;;  %v1394_v58 = vsel %vm1330_vm9, %v2661_v17, 1.0 }
 0x356   :  { %v1802_v39 = vpop.eup %1801  ;;  %v1263_v5 = vmul.f32 0.6931472, %v1800_v62  ;;  %v1294_v27 = vadd.f32 %v1278_v14, %v1259_v10  ;;  %v2821_v62 = vld [vmem:[%s3135_s3 + $0x78] sm:$0xff]  ;;  %v2846_v14 = vmul.f32 %v2767_v8, %v1290_v20  ;;  %v2861_v10 = vld [vmem:[#allocation4 + $0x28] sm:$0xff]  ;;  %v1378_v20 = vsub.f32 %v2824_v35, %v2680_v45 }
 0x357   :  { %v1265_v48 = vmul.f32 0.6931472, %v1802_v39  ;;  %v1295_v63 = vadd.f32 %v1279_v51, %v1261_v25  ;;  %3308 = vst [vmem:[#allocation26_spill] sm:$0xff] %v2821_v62  ;;  %v2849_v51 = vmul.f32 %v2772_v29, %v1291_v15  ;;  %v2852_v39 = vmul.f32 %v2777_v42, %v1292_v30  ;;  %v2863_v25 = vld [vmem:[#allocation4 + $0x30] sm:$0xff]  ;;  %v2894_v17 = vld [vmem:[#allocation4 + $0x48] sm:$0xff]  ;;  %v2914_v15 = vld [vmem:[#allocation4 + $0x58] sm:$0xff] }
 0x358   :  { %v1296_v38 = vadd.f32 %v1280_v52, %v1263_v5  ;;  %v2866_v28 = vmul.f32 %v2788_v57, %v1293_v19  ;;  %v2869_v5 = vmul.f32 %v2793_v11, %v1294_v27  ;;  %v1395_v30 = vsel %vm1331_vm2, %v2671_v34, 1.0  ;;  %v2896_v19 = vld [vmem:[#allocation4 + $0x50] sm:$0xff] }
 0x359   :  { %v2837_v22 = vadd.f32 %v1281_v26, %v1265_v48  ;;  %v2872_v52 = vmul.f32 %v2798_v53, %v1295_v63  ;;  %v2877_v26 = vld [vmem:[#allocation4 + $0x38] sm:$0xff]  ;;  %vm1343_vm14 = vcmp.gt.f32.partialorder %v2808_v50, 0.0  ;;  %vm1345_vm1 = vcmp.gt.f32.partialorder %v2821_v62, 0.0 }
 0x35a   :  { %v2882_v48 = vmul.f32 %v2857_v54, %v1296_v38  ;;  %v1396_v34 = vsel %vm1332_vm7, %v2676_v21, 1.0  ;;  %v1397_v45 = vsel %vm1333_vm3, %v2685_v13, 1.0  ;;  %1803 = vrcp.f32 %v1394_v58 }
 0x35b   :  { %v1398_v21 = vsel %vm1334_vm10, %v2713_v2, 1.0  ;;  %1805 = vrcp.f32 %v1395_v30  ;;  %v1399_v58 = vsel %vm1335_vm6, %v2747_v7, 1.0  ;;  %v1400_v27 = vsel %vm1336_vm4, %v2752_v16, 1.0 }
 0x35c   :  { %1807 = vrcp.f32 %v1396_v34  ;;  %v1862_v63 = vmov 0.0   ;;  %v1401_v7 = vsel %vm1337_vm5, %v2757_v41, 1.0  ;;  %v1403_v34 = vsel %vm1339_vm11, %v2772_v29, 1.0 }
 0x35d   :  { %1809 = vrcp.f32 %v1397_v45  ;;  %v1499_v2 = vsel %vm1330_vm9, 1.0, %v1862_v63  ;;  %v1500_v30 = vsel %vm1331_vm2, 1.0, %v1862_v63  ;;  %v1501_v16 = vsel %vm1332_vm7, 1.0, %v1862_v63 }
 0x35e   :  { %1811 = vrcp.f32 %v1398_v21  ;;  %v1402_v45 = vsel %vm1338_vm12, %v2767_v8, 1.0  ;;  %v1502_v13 = vsel %vm1333_vm3, 1.0, %v1862_v63  ;;  %v1404_v41 = vsel %vm3161_vm0, %v2777_v42, 1.0  ;;  %v2964_v8 = vld [vmem:[%s3136_s4 + $0x78] sm:$0xff] }
 0x35f   :  { %1813 = vrcp.f32 %v1399_v58  ;;  %v1515_v21 = vsel %vm1458_vm8, %v1499_v2, 0.0  ;;  %v1516_v35 = vsel %vm1458_vm8, %v1500_v30, 0.0  ;;  %v1503_v29 = vsel %vm1334_vm10, 1.0, %v1862_v63 }
 0x360   :  { %1815 = vrcp.f32 %v1400_v27  ;;  %v1517_v58 = vadd.f32 %v1516_v35, %v1515_v21  ;;  %v1518_v38 = vsel %vm1458_vm8, %v1501_v16, 0.0  ;;  %v1405_v42 = vsel %vm1341_vm15, %v2788_v57, 1.0 }
 0x361   :  { %1817 = vrcp.f32 %v1401_v7  ;;  %vm3309_vm0 = vcmp.gt.f32.partialorder %v2803_v31, 0.0  ;;  %v1520_v2 = vsel %vm1458_vm8, %v1502_v13, 0.0  ;;  %v1504_v30 = vsel %vm1335_vm6, 1.0, %v1862_v63 }
 0x362   :  { %v1406_v27 = vsel %vm3309_vm0, %v2793_v11, 1.0  ;;  %1819 = vrcp.f32 %v1402_v45  ;;  %v1505_v35 = vsel %vm1336_vm4, 1.0, %v1862_v63  ;;  %v1519_v7 = vadd.f32 %v1518_v38, %v1517_v58 }
 0x363   :  { %1821 = vrcp.f32 %v1403_v34  ;;  %v1407_v57 = vsel %vm1343_vm14, %v2798_v53, 1.0  ;;  %v1408_v11 = vsel %vm1344_vm13, %v2857_v54, 1.0  ;;  %v1409_v13 = vsel %vm1345_vm1, %v2964_v8, 1.0 }
 0x364   :  { %v1804_v16 = vpop.eup %1803  ;;  %v1522_v45 = vsel %vm1458_vm8, %v1503_v29, 0.0  ;;  %1823 = vrcp.f32 %v1404_v41  ;;  %v1506_v38 = vsel %vm1337_vm5, 1.0, %v1862_v63  ;;  %v1521_v58 = vadd.f32 %v1520_v2, %v1519_v7 }
 0x365   :  { %v1806_v34 = vpop.eup %1805  ;;  %v1411_v21 = vmul.f32 %v1804_v16, %v1378_v20  ;;  %v3310_v53 = vsub.f32 %v2826_v1, %v2704_v4  ;;  %v1507_v54 = vsel %vm1338_vm12, 1.0, %v1862_v63  ;;  %v1524_v62 = vsel %vm1458_vm8, %v1504_v30, 0.0 }
 0x366   :  { %v1808_v50 = vpop.eup %1807  ;;  %v1526_v29 = vsel %vm1458_vm8, %v1505_v35, 0.0  ;;  %v3311_v41 = vsub.f32 %v2839_v33, %v2708_v49  ;;  %1825 = vrcp.f32 %v1405_v42  ;;  %v1523_v7 = vadd.f32 %v1522_v45, %v1521_v58 }
 0x367   :  { %v1413_v3 = vmul.f32 %v1806_v34, %v3310_v53  ;;  %v1810_v20 = vpop.eup %1809  ;;  %v1442_v2 = vsel %vm1330_vm9, %v1411_v21, 0.0  ;;  %v3312_v1 = vsub.f32 %v2841_v43, %v2722_v61  ;;  %1827 = vrcp.f32 %v1406_v27 }
 0x368   :  { %v1415_v16 = vmul.f32 %v1808_v50, %v3311_v41  ;;  %v1812_v4 = vpop.eup %1811  ;;  %v1459_v35 = vsel %vm1458_vm8, %v1442_v2, 0.0  ;;  %v3313_v49 = vsub.f32 %v2843_v9, %v2742_v24  ;;  %1829 = vrcp.f32 %v1407_v57 }
 0x369   :  { %v1417_v34 = vmul.f32 %v1810_v20, %v3312_v1  ;;  %v1443_v30 = vsel %vm1331_vm2, %v1413_v3, 0.0  ;;  %v1814_v53 = vpop.eup %1813  ;;  %v3314_v61 = vsub.f32 %v2861_v10, %v2829_v46  ;;  %v3315_v24 = vsub.f32 %v2863_v25, %v2832_v59  ;;  %v1358_v25 = vld [vmem:[#allocation4 + $0x60] sm:$0xff] }
 0x36a   :  { %v1419_v50 = vmul.f32 %v1812_v4, %v3313_v49  ;;  %v1444_v36 = vsel %vm1332_vm7, %v1415_v16, 0.0  ;;  %v1460_v33 = vsel %vm1458_vm8, %v1443_v30, 0.0  ;;  %v1816_v42 = vpop.eup %1815  ;;  %v1525_v21 = vadd.f32 %v1524_v62, %v1523_v7  ;;  %v1359_v30 = vld [vmem:[#allocation4 + $0x68] sm:$0xff]  ;;  %vm3323_vm7 = vmmov %vm3309_vm0 }
 0x36b   :  { %v1421_v43 = vmul.f32 %v1814_v53, %v3314_v61  ;;  %v1445_v60 = vsel %vm1333_vm3, %v1417_v34, 0.0  ;;  %v1461_v3 = vadd.f32 %v1460_v33, %v1459_v35  ;;  %v1462_v27 = vsel %vm1458_vm8, %v1444_v36, 0.0  ;;  %v1818_v45 = vpop.eup %1817  ;;  %vm3324_vm3 = vmmov %vm3309_vm0 }
 0x36c   :  { %v1423_v9 = vmul.f32 %v1816_v42, %v3315_v24  ;;  %v1446_v18 = vsel %vm1334_vm10, %v1419_v50, 0.0  ;;  %v1464_v57 = vsel %vm1458_vm8, %v1445_v60, 0.0  ;;  %v1820_v58 = vpop.eup %1819  ;;  %v3316_v46 = vsub.f32 %v2877_v26, %v2835_v55 }
 0x36d   :  { %v1447_v10 = vsel %vm1335_vm6, %v1421_v43, 0.0  ;;  %v1463_v20 = vadd.f32 %v1462_v27, %v1461_v3  ;;  %v1528_v41 = vsel %vm1458_vm8, %v1506_v38, 0.0  ;;  %v1822_v16 = vpop.eup %1821  ;;  %1831 = vrcp.f32 %v1408_v11  ;;  %v1361_v3 = vld [vmem:[#allocation4 + $0x78] sm:$0xff] }
 0x36e   :  { %v1425_v47 = vmul.f32 %v1818_v45, %v3316_v46  ;;  %v1466_v59 = vsel %vm1458_vm8, %v1446_v18, 0.0  ;;  %v1508_v23 = vsel %vm1339_vm11, 1.0, %v1862_v63  ;;  %v1527_v62 = vadd.f32 %v1526_v29, %v1525_v21  ;;  %v1824_v7 = vpop.eup %1823 }
 0x36f   :  { %v3317_v55 = vsub.f32 %v2879_v32, %v2846_v14  ;;  %v1448_v44 = vsel %vm1336_vm4, %v1423_v9, 0.0  ;;  %v1465_v2 = vadd.f32 %v1464_v57, %v1463_v20  ;;  %v1530_v38 = vsel %vm1458_vm8, %v1507_v54, 0.0 }
 0x370   :  { %1833 = vrcp.f32 %v1409_v13  ;;  %v1468_v11 = vsel %vm1458_vm8, %v1447_v10, 0.0  ;;  %vm3318_vm9 = vcmp.gt.f32.partialorder %v2762_v40, 0.0  ;;  %v1529_v29 = vadd.f32 %v1528_v41, %v1527_v62  ;;  %v1826_v54 = vpop.eup %1825 }
 0x371   :  { %v1427_v26 = vmul.f32 %v1820_v58, %v3317_v55  ;;  %v1509_v4 = vsel %vm3318_vm9, 1.0, %v1862_v63  ;;  %v3319_v1 = vsub.f32 %v2894_v17, %v2849_v51  ;;  %v1449_v56 = vsel %vm1337_vm5, %v1425_v47, 0.0  ;;  %v1828_v50 = vpop.eup %1827  ;;  %v1360_v51 = vld [vmem:[#allocation4 + $0x70] sm:$0xff]  ;;  %vm3322_vm2 = vmmov %vm3318_vm9 }
 0x372   :  { %v1467_v32 = vadd.f32 %v1466_v59, %v1465_v2  ;;  %v1532_v34 = vsel %vm1458_vm8, %v1508_v23, 0.0  ;;  %v1390_v13 = vsub.f32 %v1358_v25, %v2869_v5  ;;  %v1470_v35 = vsel %vm1458_vm8, %v1448_v44, 0.0  ;;  %v1830_v5 = vpop.eup %1829 }
 0x373   :  { %v1429_v14 = vmul.f32 %v1822_v16, %v3319_v1  ;;  %v1510_v53 = vsel %vm1341_vm15, 1.0, %v1862_v63  ;;  %v1531_v49 = vadd.f32 %v1530_v38, %v1529_v29  ;;  %v3320_v6 = vsub.f32 %v2896_v19, %v2852_v39 }
 0x374   :  { %v1450_v36 = vsel %vm1338_vm12, %v1427_v26, 0.0  ;;  %v1469_v33 = vadd.f32 %v1468_v11, %v1467_v32  ;;  %v1534_v42 = vsel %vm1458_vm8, %v1509_v4, 0.0  ;;  %v1377_v61 = vmul.f32 %v2964_v8, %v2837_v22 }
 0x375   :  { %v1431_v17 = vmul.f32 %v1824_v7, %v3320_v6  ;;  %v1472_v43 = vsel %vm1458_vm8, %v1449_v56, 0.0  ;;  %v1533_v60 = vadd.f32 %v1532_v34, %v1531_v49  ;;  %v1391_v27 = vsub.f32 %v1359_v30, %v2872_v52 }
 0x376   :  { %v3321_v39 = vsub.f32 %v2914_v15, %v2866_v28  ;;  %v1451_v0 = vsel %vm1339_vm11, %v1429_v14, 0.0  ;;  %v1471_v45 = vadd.f32 %v1470_v35, %v1469_v33  ;;  %v1392_v24 = vsub.f32 %v1360_v51, %v2882_v48 }
 0x377   :  { %v1474_v9 = vsel %vm1458_vm8, %v1450_v36, 0.0  ;;  %v1535_v18 = vadd.f32 %v1534_v42, %v1533_v60  ;;  %v1536_v22 = vsel %vm1458_vm8, %v1510_v53, 0.0  ;;  %v1435_v8 = vmul.f32 %v1828_v50, %v1390_v13  ;;  %v1832_v15 = vpop.eup %1831 }
 0x378   :  { %v1433_v19 = vmul.f32 %v1826_v54, %v3321_v39  ;;  %v1452_v57 = vsel %vm3322_vm2, %v1431_v17, 0.0  ;;  %v1473_v52 = vadd.f32 %v1472_v43, %v1471_v45  ;;  %v1511_v28 = vsel %vm3323_vm7, 1.0, %v1862_v63 }
 0x379   :  { %v1393_v37 = vsub.f32 %v1361_v3, %v1377_v61  ;;  %v1476_v21 = vsel %vm1458_vm8, %v1451_v0, 0.0  ;;  %v1437_v58 = vmul.f32 %v1830_v5, %v1391_v27  ;;  %v1537_v47 = vadd.f32 %v1536_v22, %v1535_v18 }
 0x37a   :  { %v1453_v48 = vsel %vm1341_vm15, %v1433_v19, 0.0  ;;  %v1475_v46 = vadd.f32 %v1474_v9, %v1473_v52  ;;  %v1834_v10 = vpop.eup %1833  ;;  %v1478_v20 = vsel %vm1458_vm8, %v1452_v57, 0.0  ;;  %v1538_v40 = vsel %vm1458_vm8, %v1511_v28, 0.0 }
 0x37b   :  { %v1439_v41 = vmul.f32 %v1832_v15, %v1392_v24  ;;  %v1454_v16 = vsel %vm3324_vm3, %v1435_v8, 0.0  ;;  %v1512_v62 = vsel %vm1343_vm14, 1.0, %v1862_v63  ;;  %v1480_v25 = vsel %vm1458_vm8, %v1453_v48, 0.0 }
 0x37c   :  { %v1477_v59 = vadd.f32 %v1476_v21, %v1475_v46  ;;  %v1441_v12 = vmul.f32 %v1834_v10, %v1393_v37  ;;  %v1455_v55 = vsel %vm1343_vm14, %v1437_v58, 0.0  ;;  %v1539_v44 = vadd.f32 %v1538_v40, %v1537_v47 }
 0x37d   :  { %v1482_v2 = vsel %vm1458_vm8, %v1454_v16, 0.0  ;;  %v1540_v38 = vsel %vm1458_vm8, %v1512_v62, 0.0  ;;  %v1456_v31 = vsel %vm1344_vm13, %v1439_v41, 0.0  ;;  %v1513_v4 = vsel %vm1344_vm13, 1.0, %v1862_v63 }
 0x37e   :  { %v1479_v26 = vadd.f32 %v1478_v20, %v1477_v59  ;;  %v1484_v29 = vsel %vm1458_vm8, %v1455_v55, 0.0  ;;  %v1457_v14 = vsel %vm1345_vm1, %v1441_v12, 0.0  ;;  %v1541_v32 = vadd.f32 %v1540_v38, %v1539_v44 }
 0x37f   :  { %v1486_v34 = vsel %vm1458_vm8, %v1456_v31, 0.0  ;;  %v1542_v54 = vsel %vm1458_vm8, %v1513_v4, 0.0  ;;  %v1514_v13 = vsel %vm1345_vm1, 1.0, %v1862_v63  ;;  %v1488_v35 = vsel %vm1458_vm8, %v1457_v14, 0.0 }
 0x380   :  { %v1481_v11 = vadd.f32 %v1480_v25, %v1479_v26  ;;  %v1543_v49 = vadd.f32 %v1542_v54, %v1541_v32  ;;  %v1544_v50 = vsel %vm1458_vm8, %v1514_v13, 0.0  ;;  %v1555_v45 = vlaneseq }
 0x382   :  { %v1483_v56 = vadd.f32 %v1482_v2, %v1481_v11  ;;  %v1545_v6 = vadd.f32 %v1544_v50, %v1543_v49  ;;  %v1556_v24 = vshrl.u32 %v1555_v45, 7 }
 0x384   :  { %v1485_v30 = vadd.f32 %v1484_v29, %v1483_v56  ;;  %vm1558_vm10 = vcmp.eq.s32.totalorder %v1556_v24, 1  ;;  %vm1557_vm6 = vcmp.eq.s32.totalorder %v1556_v24, 0 }
 0x386   :  { %v1487_v53 = vadd.f32 %v1486_v34, %v1485_v30 }
 0x388   :  { %v1489_v51 = vadd.f32 %v1488_v35, %v1487_v53 }
 0x38a   :  { %1490 = vadd.xlane.f32.xlu0 %v1489_v51 }
 0x38e   :  { %1546 = vadd.xlane.f32.xlu0 %v1545_v6 }
 0x417   :  { %v1491_v17 = vpop.xlane.xlu0 %1490 }
 0x418   :  { %v1492_v36 = vrot.slane %v1491_v17, 4 }
 0x41a   :  { %v1493_v33 = vadd.f32 %v1492_v36, %v1491_v17 }
 0x41b   :  { %v1547_v42 = vpop.xlane.xlu0 %1546 }
 0x41c   :  { %v1494_v5 = vrot.slane %v1493_v33, 2  ;;  %v1548_v61 = vrot.slane %v1547_v42, 4 }
 0x41e   :  { %v1549_v43 = vadd.f32 %v1548_v61, %v1547_v42  ;;  %v1495_v60 = vadd.f32 %v1494_v5, %v1493_v33 }
 0x420   :  { %v1550_v3 = vrot.slane %v1549_v43, 2  ;;  %v1496_v63 = vrot.slane %v1495_v60, 1 }
 0x422   :  { %v1551_v27 = vadd.f32 %v1550_v3, %v1549_v43  ;;  %v1497_v39 = vadd.f32 %v1496_v63, %v1495_v60 }
 0x424   :  { %1679 = vpush %v1497_v39  ;;  %v1552_v19 = vrot.slane %v1551_v27, 1 }
 0x426   :  { %v1553_v0 = vadd.f32 %v1552_v19, %v1551_v27 }
 0x428   :  { %1681 = vpush %v1553_v0 }
 0x455   :  { %s1680_s4 = spop %1679 }
 0x456   :  { %v1561_v18 = vstv %s1680_s4 }
 0x459   :  { %s1682_s8 = spop %1681 }
 0x45a   :  { %v1559_v9 = vstv %s1682_s8 }
 0x45b   :  { %v1560_v22 = vsel %vm1558_vm10, %v1559_v9, 0.0 }
 0x45c   :  { %v1562_v8 = vsel %vm1557_vm6, %v1561_v18, %v1560_v22 }
 0x45d   :  { %1563 = vst [vmem:[#allocation7] sm:$0xff] %v1562_v8 }
 0x45e PF:  { %p1614_p1 = scmp.gt.s32.totalorder %s3132_s0, 0 }
 0x45f   :  { %v1863_v57 = vmov (!%p1614_p1), 0.0  }
 0x460   :  { %1567 = sbr.rel (%p1614_p1) target bundleno = 1127 (0x467), region = 53  ;;  %1568 = vst [vmem:[#allocation7] sm:$0xff] (!%p1614_p1), %v1863_v57 }
 0x467 PF:  { %s1864_s5 = smov [#allocation7]  }
 0x468   :  { %s1575_s10 = sshll.u32 %s1864_s5, 4  ;;  %s1576_s10 = int_to_ptr.vmem [resolvable:$true] %s1575_s10 }
 0x469   :  { %s1835_s11 = scalar_lea.vmem %s1576_s10, 128  ;;  %p1840_p3 = scmp.lt.s32.totalorder %s1576_s10, %s1576_s10 }
 0x46a   :  { %p1836_p2 = scmp.ne.s32.totalorder %s1576_s10, %s1835_s11  ;;  %p1841_p4 = scmp.lt.s32.totalorder %s1835_s11, %s1835_s11 }
 0x46c   :  { %p1842_p5 = por %p1841_p4, %p1840_p3 }
 0x46e   :  { %p1843_p6 = pnand %p1842_p5, %p1836_p2 }
 0x470   :  { %1846 = shalt.err (!%p1843_p6)
}
 0x471   :  { %s1847_s14 = scalar_lea.hbm %s3139_s7, 128 }
 0x472   :  { %p1848_p7 = scmp.ne.s32.totalorder %s3139_s7, %s1847_s14  ;;  %p1851_p8 = scmp.lt.u32.totalorder %s1847_s14, %s3139_s7 }
 0x474   :  { %p1853_p9 = pnand %p1851_p8, %p1848_p7 }
 0x476   :  { %1856 = shalt.err (!%p1853_p9)
}
 0x477   :  { %1578 = dma.vmem_to_hbm [thread:$0]  %s1576_s10, 128, %s3139_s7, [#allocation8]  }
 0x478   :  { %1857 = dma.done.wait [#allocation8], 128  }
 0x479   :  { %1858 = vsyncadd [#allocation8], 4294967168 }
 0x47a   :  { %1582 = vsyncpa [#allocation8], 1 }

</bundles_post_ra>
